<compile_context>
chip_gen: v6e
topology: v6e:2x2x1
jax: 0.10.0
libtpu: 0.0.40
codegen_flags: <defaults>
</compile_context>

<pallas_src>
import math
from functools import partial

import numpy as np
import jax
import jax.numpy as jnp
from jax import lax
from jax.experimental import pallas as pl
from jax.experimental.pallas import tpu as pltpu


# ---------------------------------------------------------------------------
# Pallas kernel: fused  act( W @ Xcol + b )
# ---------------------------------------------------------------------------
def _mm_bias_act_kernel(w_ref, x_ref, b_ref, o_ref, *, act):
    # w_ref: (Cout, K)  x_ref: (K, TM)  b_ref: (Cout, 1)  o_ref: (Cout, TM)
    y = jnp.dot(w_ref[...], x_ref[...], preferred_element_type=jnp.float32)
    y = y + b_ref[...]                       # bias broadcast along the lane axis
    if act == "silu":
        y = y * jax.nn.sigmoid(y)            # EUP sigmoid + VPU mul
    elif act == "relu":
        y = jnp.maximum(y, 0.0)
    # act == "none": identity
    o_ref[...] = y


def _pad_cols_and_tile(m: int, max_tile: int = 2048):
    """Pad lane axis to a 128-multiple; pick a 128-multiple tile that divides it."""
    m_pad = ((m + 127) // 128) * 128
    if m_pad <= max_tile:
        return m_pad, m_pad                   # single grid step
    for t in (2048, 1024, 512, 256, 128):
        if m_pad % t == 0:
            return m_pad, t
    return m_pad, 128                         # unreachable (m_pad is 128-multiple)


def _matmul_bias_act(w, xcol, b, act: str):
    """act(w @ xcol + b) as a single pallas_call (weights/bias stay resident)."""
    cout, k = w.shape
    k2, m = xcol.shape
    assert k == k2 and b.shape == (cout, 1)
    m_pad, tm = _pad_cols_and_tile(m)
    if m_pad != m:
        xcol = jnp.pad(xcol, ((0, 0), (0, m_pad - m)))   # lane-dense padding
    y = pl.pallas_call(
        partial(_mm_bias_act_kernel, act=act),
        out_shape=jax.ShapeDtypeStruct((cout, m_pad), jnp.float32),
        grid=(m_pad // tm,),
        in_specs=[
            pl.BlockSpec((cout, k), lambda j: (0, 0)),    # folded conv weight (resident)
            pl.BlockSpec((k, tm), lambda j: (0, j)),      # patch matrix (lanes)
            pl.BlockSpec((cout, 1), lambda j: (0, 0)),    # folded bias (resident)
        ],
        out_specs=pl.BlockSpec((cout, tm), lambda j: (0, j)),
        compiler_params=pltpu.CompilerParams(dimension_semantics=("parallel",)),
    )(w, xcol, b)
    return y[:, :m] if m_pad != m else y


# ---------------------------------------------------------------------------
# Wrapper glue: im2col, bilinear-resize matrices, BN folding / RepVGG reparam
# ---------------------------------------------------------------------------
def _im2col(x, k: int, stride: int, pad: int):
    """(N,C,H,W) -> (C*k*k, N*Ho*Wo). Row order (c, di, dj) matches OIHW weights."""
    n, c, h, w = x.shape
    hp, wp = h + 2 * pad, w + 2 * pad
    ho = (hp - k) // stride + 1
    wo = (wp - k) // stride + 1
    xp = jnp.pad(x, ((0, 0), (0, 0), (pad, pad), (pad, pad)))
    taps = []
    for di in range(k):
        for dj in range(k):
            taps.append(xp[:, :, di:di + stride * ho:stride,
                              dj:dj + stride * wo:stride])       # (N, C, Ho, Wo)
    col = jnp.stack(taps, axis=0)                 # (k*k, N, C, Ho, Wo)
    col = col.reshape(k * k, n, c, ho * wo)
    col = col.transpose(2, 0, 1, 3)               # (C, k*k, N, Ho*Wo)
    return col.reshape(c * k * k, n * ho * wo), ho, wo


def _conv_bn_act(x, w2d, b, *, k, stride, pad, act):
    """Fused Conv(kxk, stride, pad) + folded BN + activation (one pallas_call)."""
    n = x.shape[0]
    cout = w2d.shape[0]
    xcol, ho, wo = _im2col(x, k, stride, pad)
    y = _matmul_bias_act(w2d, xcol, b, act)       # (Cout, N*Ho*Wo)
    return y.reshape(cout, n, ho, wo).transpose(1, 0, 2, 3)


def _interp_matrix_align_corners(in_size: int, out_size: int) -> np.ndarray:
    """PyTorch F.interpolate(mode='bilinear', align_corners=True), 1-D matrix."""
    r = np.zeros((out_size, in_size), dtype=np.float32)
    if out_size == 1 or in_size == 1:
        r[:, 0] = 1.0
        return r
    scale = (in_size - 1) / (out_size - 1)
    for i in range(out_size):
        src = i * scale
        i0 = min(int(np.floor(src)), in_size - 1)
        frac = src - i0
        r[i, i0] += 1.0 - frac
        if frac > 0.0:
            r[i, min(i0 + 1, in_size - 1)] += frac
    return r


def _bilinear_resize(x, hout: int, wout: int):
    """Exact align_corners=True bilinear resize as a Pallas matmul."""
    n, c, h, w = x.shape
    if (h, w) == (hout, wout):
        return x
    mt = jnp.asarray(np.kron(_interp_matrix_align_corners(h, hout),
                             _interp_matrix_align_corners(w, wout)).T)
    y = _matmul_bias_act(x.reshape(n * c, h * w), mt,
                         jnp.zeros((n * c, 1), jnp.float32), act="none")
    return y.reshape(n, c, hout, wout)


def _fold_conv_bn(w, gamma, beta, mean, var, eps):
    scale = gamma / jnp.sqrt(var + eps)
    return w * scale[:, None, None, None], beta - scale * mean


def fold_convbnact(p, eps=1e-5):
    wf, bf = _fold_conv_bn(p["w"], p["gamma"], p["beta"], p["mean"], p["var"], eps)
    cout, cin, k, _ = p["w"].shape
    return wf.reshape(cout, cin * k * k), bf.reshape(cout, 1)


def fold_repvgg(p, eps=1e-5):
    # 3x3-BN + 1x1-BN branches reparameterised into one 3x3 conv (exact in eval
    # mode). No identity branch: every RepVGGplusBlock here has cin != cout.
    w3, b3 = _fold_conv_bn(p["w3"], *p["bn3"], eps)
    w1, b1 = _fold_conv_bn(p["w1"], *p["bn1"], eps)
    weq = w3 + jnp.pad(w1, ((0, 0), (0, 0), (1, 1), (1, 1)))
    beq = b3 + b1
    cout, cin = weq.shape[:2]
    return weq.reshape(cout, cin * 9), beq.reshape(cout, 1)


def fold_short_bifpn_params(raw, eps=1e-5):
    return {name: (fold_repvgg(p, eps) if "w3" in p else fold_convbnact(p, eps))
            for name, p in raw.items()}


# ---------------------------------------------------------------------------
# ShortBiFPN forward (fuse_mode='cat') using the Pallas kernels
# ---------------------------------------------------------------------------
def short_bifpn_forward(p3, p4, p5, fp):
    """fp = folded params dict {layer_name: (w2d, bias)}."""
    # --- top-down (up) path ---
    p5_up = _bilinear_resize(p5, p4.shape[2], p4.shape[3])
    p4_fused_up = _conv_bn_act(jnp.concatenate([p5_up, p4], axis=1),
                               *fp["p4_fuseconv_up"],
                               k=3, stride=1, pad=1, act="relu")
    p4u_up = _bilinear_resize(p4_fused_up, p3.shape[2], p3.shape[3])
    p3_fused_up = _conv_bn_act(jnp.concatenate([p4u_up, p3], axis=1),
                               *fp["p3_fuseconv_up"],
                               k=3, stride=1, pad=1, act="relu")
    # --- bottom-up (down) path ---
    p3_dd = _conv_bn_act(p3_fused_up, *fp["p3_downconv_down"],
                         k=3, stride=2, pad=1, act="silu")
    p4_fused_down = _conv_bn_act(jnp.concatenate([p3_dd, p4_fused_up, p4], axis=1),
                                 *fp["p4_fuseconv_down"],
                                 k=3, stride=1, pad=1, act="relu")
    p4_dd = _conv_bn_act(p4_fused_down, *fp["p4_downconv_down"],
                         k=3, stride=2, pad=1, act="silu")
    p3_short = _conv_bn_act(p3, *fp["p3_downconv_short"],
                            k=5, stride=4, pad=2, act="silu")
    p5_fused_down = _conv_bn_act(jnp.concatenate([p4_dd, p5, p3_short], axis=1),
                                 *fp["p5_fuseconv_down"],
                                 k=3, stride=1, pad=1, act="relu")
    return p3_fused_up, p4_fused_down, p5_fused_down


# ---------------------------------------------------------------------------
# Parameter init (deterministic) + pure-JAX reference (unfused, per-branch)
# ---------------------------------------------------------------------------
def _init_bn(key, c):
    kg, kb, km, kv = jax.random.split(key, 4)
    gamma = 1.0 + 0.1 * jax.random.normal(kg, (c,), jnp.float32)
    beta = 0.1 * jax.random.normal(kb, (c,), jnp.float32)
    mean = 0.1 * jax.random.normal(km, (c,), jnp.float32)
    var = jax.nn.softplus(jax.random.normal(kv, (c,), jnp.float32)) + 0.5
    return gamma, beta, mean, var


def _init_convbnact(key, cin, cout, k):
    kw, kbn = jax.random.split(key)
    w = jax.random.normal(kw, (cout, cin, k, k), jnp.float32) / math.sqrt(cin * k * k)
    gamma, beta, mean, var = _init_bn(kbn, cout)
    return dict(w=w, gamma=gamma, beta=beta, mean=mean, var=var)


def _init_repvgg(key, cin, cout):
    k3, k1, kb3, kb1 = jax.random.split(key, 4)
    w3 = jax.random.normal(k3, (cout, cin, 3, 3), jnp.float32) / math.sqrt(cin * 9)
    w1 = jax.random.normal(k1, (cout, cin, 1, 1), jnp.float32) / math.sqrt(cin)
    return dict(w3=w3, bn3=_init_bn(kb3, cout), w1=w1, bn1=_init_bn(kb1, cout))


def init_short_bifpn_params(key, in_channels):
    c3, c4, c5 = in_channels
    f45, f34 = c4 + c5, c3 + c4
    ks = jax.random.split(key, 7)
    return {
        "p3_downconv_short": _init_convbnact(ks[0], c3, c3, 5),
        "p4_fuseconv_up": _init_repvgg(ks[1], f45, c4),
        "p3_fuseconv_up": _init_repvgg(ks[2], f34, c3),
        "p3_downconv_down": _init_convbnact(ks[3], c3, c3, 3),
        "p4_fuseconv_down": _init_repvgg(ks[4], f34 + c4, c4),
        "p4_downconv_down": _init_convbnact(ks[5], c4, c4, 3),
        "p5_fuseconv_down": _init_repvgg(ks[6], f45 + c3, c5),
    }


_DN = ("NCHW", "OIHW", "NCHW")


def _conv_ref(x, w, stride, pad):
    return lax.conv_general_dilated(x, w, (stride, stride),
                                    ((pad, pad), (pad, pad)),
                                    dimension_numbers=_DN)


def _bn_ref(x, gamma, beta, mean, var, eps=1e-5):
    s = gamma / jnp.sqrt(var + eps)
    return x * s[None, :, None, None] + (beta - s * mean)[None, :, None, None]


def _convbnact_ref(x, p, k, stride, pad, eps=1e-5):
    y = _bn_ref(_conv_ref(x, p["w"], stride, pad),
                p["gamma"], p["beta"], p["mean"], p["var"], eps)
    return y * jax.nn.sigmoid(y)                      # SiLU


def _repvgg_ref(x, p, eps=1e-5):
    y = (_bn_ref(_conv_ref(x, p["w3"], 1, 1), *p["bn3"], eps) +
         _bn_ref(_conv_ref(x, p["w1"], 1, 0), *p["bn1"], eps))
    return jnp.maximum(y, 0.0)                        # ReLU


def _resize_ref(x, hout, wout):
    n, c, h, w = x.shape
    rh = jnp.asarray(_interp_matrix_align_corners(h, hout))
    rw = jnp.asarray(_interp_matrix_align_corners(w, wout))
    return jnp.einsum("oh,nchw,pw->ncop", rh, x, rw)


def short_bifpn_ref(p3, p4, p5, raw):
    p5_up = _resize_ref(p5, p4.shape[2], p4.shape[3])
    p4_fu = _repvgg_ref(jnp.concatenate([p5_up, p4], axis=1), raw["p4_fuseconv_up"])
    p4u_up = _resize_ref(p4_fu, p3.shape[2], p3.shape[3])
    p3_fu = _repvgg_ref(jnp.concatenate([p4u_up, p3], axis=1), raw["p3_fuseconv_up"])
    p3_dd = _convbnact_ref(p3_fu, raw["p3_downconv_down"], 3, 2, 1)
    p4_fd = _repvgg_ref(jnp.concatenate([p3_dd, p4_fu, p4], axis=1),
                        raw["p4_fuseconv_down"])
    p4_dd = _convbnact_ref(p4_fd, raw["p4_downconv_down"], 3, 2, 1)
    p3_sh = _convbnact_ref(p3, raw["p3_downconv_short"], 5, 4, 2)
    p5_fd = _repvgg_ref(jnp.concatenate([p4_dd, p5, p3_sh], axis=1),
                        raw["p5_fuseconv_down"])
    return p3_fu, p4_fd, p5_fd


# ---------------------------------------------------------------------------
if __name__ == "__main__":
    in_channels = [4, 8, 16]     # (C3, C4, C5)
    spatial = [16, 8, 4]         # (H3, H4, H5), square feature maps
    batch = 2

    key = jax.random.PRNGKey(0)
    k_in, k_par = jax.random.split(key)
    p3, p4, p5 = (
        jax.random.normal(jax.random.fold_in(k_in, i), (batch, c, s, s), jnp.float32)
        for i, (c, s) in enumerate(zip(in_channels, spatial))
    )

    raw_params = init_short_bifpn_params(k_par, in_channels)
    folded_params = fold_short_bifpn_params(raw_params)

    fwd = jax.jit(short_bifpn_forward)
    outs = jax.block_until_ready(fwd(p3, p4, p5, folded_params))

    c3, c4, c5 = in_channels
    assert outs[0].shape == (batch, c3, 16, 16), outs[0].shape
    assert outs[1].shape == (batch, c4, 8, 8), outs[1].shape
    assert outs[2].shape == (batch, c5, 4, 4), outs[2].shape

    refs = short_bifpn_ref(p3, p4, p5, raw_params)
    for o, r in zip(outs, refs):
        np.testing.assert_allclose(np.asarray(o), np.asarray(r),
                                   rtol=2e-3, atol=2e-3)

    print("KERNEL_OK")
</pallas_src>

<mosaic_0001>
module attributes {stable_mosaic.version = 11 : i64} {
  func.func @_mm_bias_act_kernel(%arg0: i32, %arg1: memref<32x16xf32, #tpu.memory_space<vmem>>, %arg2: memref<16x128xf32, #tpu.memory_space<vmem>>, %arg3: memref<32x1xf32, #tpu.memory_space<vmem>>, %arg4: memref<32x128xf32, #tpu.memory_space<vmem>>) attributes {dimension_semantics = [#tpu.dimension_semantics<parallel>], iteration_bounds = array<i64: 1>, scalar_prefetch = 0 : i64, scratch_operands = 0 : i64, tpu.core_type = #tpu.core_type<tc>, window_params = [{pipeline_mode = #tpu.pipeline_mode<synchronous>, transform_indices = @transform_0, window_bounds = array<i64: 32, 16>}, {transform_indices = @transform_1, window_bounds = array<i64: 16, 128>}, {pipeline_mode = #tpu.pipeline_mode<synchronous>, transform_indices = @transform_2, window_bounds = array<i64: 32, 1>}, {transform_indices = @transform_3, window_bounds = array<i64: 32, 128>}]} {
    %c0 = arith.constant 0 : index
    %c0_0 = arith.constant 0 : index
    %0 = vector.load %arg1[%c0, %c0_0] : memref<32x16xf32, #tpu.memory_space<vmem>>, vector<32x16xf32>
    %c0_1 = arith.constant 0 : index
    %c0_2 = arith.constant 0 : index
    %1 = vector.load %arg2[%c0_1, %c0_2] : memref<16x128xf32, #tpu.memory_space<vmem>>, vector<16x128xf32>
    %cst = arith.constant dense<0.000000e+00> : vector<32x128xf32>
    %2 = tpu.matmul %0, %1, %cst {dimension_numbers = #tpu.dot_dimension_numbers<[1], [0], [0], [1], [0, 0, 1, 1], [], []>} : vector<32x16xf32>, vector<16x128xf32>, vector<32x128xf32> -> vector<32x128xf32>
    %c0_3 = arith.constant 0 : index
    %c0_4 = arith.constant 0 : index
    %3 = vector.load %arg3[%c0_3, %c0_4] : memref<32x1xf32, #tpu.memory_space<vmem>>, vector<32x1xf32>
    %4 = vector.broadcast %3 : vector<32x1xf32> to vector<32x128xf32>
    %5 = arith.addf %2, %4 : vector<32x128xf32>
    %c0_5 = arith.constant 0 : index
    %c0_6 = arith.constant 0 : index
    %6 = vector.load %arg4[%c0_5, %c0_6] : memref<32x128xf32, #tpu.memory_space<vmem>>, vector<32x128xf32>
    tpu.vector_store %arg4[%c0_5, %c0_6], %5 {strides = array<i32>} : memref<32x128xf32, #tpu.memory_space<vmem>>, vector<32x128xf32>,
    return
  }
  func.func @transform_0(%arg0: i32) -> (i32, i32) {
    %c0_i32 = arith.constant 0 : i32
    %c0_i32_0 = arith.constant 0 : i32
    %c0_i32_1 = arith.constant 0 : i32
    return %c0_i32, %c0_i32_0 : i32, i32
  }
  func.func @transform_1(%arg0: i32) -> (i32, i32) {
    %c0_i32 = arith.constant 0 : i32
    %c0_i32_0 = arith.constant 0 : i32
    return %c0_i32, %arg0 : i32, i32
  }
  func.func @transform_2(%arg0: i32) -> (i32, i32) {
    %c0_i32 = arith.constant 0 : i32
    %c0_i32_0 = arith.constant 0 : i32
    %c0_i32_1 = arith.constant 0 : i32
    return %c0_i32, %c0_i32_0 : i32, i32
  }
  func.func @transform_3(%arg0: i32) -> (i32, i32) {
    %c0_i32 = arith.constant 0 : i32
    %c0_i32_0 = arith.constant 0 : i32
    return %c0_i32, %arg0 : i32, i32
  }
}

module attributes {stable_mosaic.version = 11 : i64} {
  func.func @_mm_bias_act_kernel(%arg0: i32, %arg1: memref<8x216xf32, #tpu.memory_space<vmem>>, %arg2: memref<216x128xf32, #tpu.memory_space<vmem>>, %arg3: memref<8x1xf32, #tpu.memory_space<vmem>>, %arg4: memref<8x128xf32, #tpu.memory_space<vmem>>) attributes {dimension_semantics = [#tpu.dimension_semantics<parallel>], iteration_bounds = array<i64: 1>, scalar_prefetch = 0 : i64, scratch_operands = 0 : i64, tpu.core_type = #tpu.core_type<tc>, window_params = [{pipeline_mode = #tpu.pipeline_mode<synchronous>, transform_indices = @transform_0, window_bounds = array<i64: 8, 216>}, {transform_indices = @transform_1, window_bounds = array<i64: 216, 128>}, {pipeline_mode = #tpu.pipeline_mode<synchronous>, transform_indices = @transform_2, window_bounds = array<i64: 8, 1>}, {transform_indices = @transform_3, window_bounds = array<i64: 8, 128>}]} {
    %c0 = arith.constant 0 : index
    %c0_0 = arith.constant 0 : index
    %0 = vector.load %arg1[%c0, %c0_0] : memref<8x216xf32, #tpu.memory_space<vmem>>, vector<8x216xf32>
    %c0_1 = arith.constant 0 : index
    %c0_2 = arith.constant 0 : index
    %1 = vector.load %arg2[%c0_1, %c0_2] : memref<216x128xf32, #tpu.memory_space<vmem>>, vector<216x128xf32>
    %cst = arith.constant dense<0.000000e+00> : vector<8x128xf32>
    %2 = tpu.matmul %0, %1, %cst {dimension_numbers = #tpu.dot_dimension_numbers<[1], [0], [0], [1], [0, 0, 1, 1], [], []>} : vector<8x216xf32>, vector<216x128xf32>, vector<8x128xf32> -> vector<8x128xf32>
    %c0_3 = arith.constant 0 : index
    %c0_4 = arith.constant 0 : index
    %3 = vector.load %arg3[%c0_3, %c0_4] : memref<8x1xf32, #tpu.memory_space<vmem>>, vector<8x1xf32>
    %4 = vector.broadcast %3 : vector<8x1xf32> to vector<8x128xf32>
    %5 = arith.addf %2, %4 : vector<8x128xf32>
    %cst_5 = arith.constant 0.000000e+00 : f32
    %6 = vector.broadcast %cst_5 : f32 to vector<8x128xf32>
    %7 = arith.maximumf %5, %6 : vector<8x128xf32>
    %c0_6 = arith.constant 0 : index
    %c0_7 = arith.constant 0 : index
    %8 = vector.load %arg4[%c0_6, %c0_7] : memref<8x128xf32, #tpu.memory_space<vmem>>, vector<8x128xf32>
    tpu.vector_store %arg4[%c0_6, %c0_7], %7 {strides = array<i32>} : memref<8x128xf32, #tpu.memory_space<vmem>>, vector<8x128xf32>,
    return
  }
  func.func @transform_0(%arg0: i32) -> (i32, i32) {
    %c0_i32 = arith.constant 0 : i32
    %c0_i32_0 = arith.constant 0 : i32
    %c0_i32_1 = arith.constant 0 : i32
    return %c0_i32, %c0_i32_0 : i32, i32
  }
  func.func @transform_1(%arg0: i32) -> (i32, i32) {
    %c0_i32 = arith.constant 0 : i32
    %c0_i32_0 = arith.constant 0 : i32
    return %c0_i32, %arg0 : i32, i32
  }
  func.func @transform_2(%arg0: i32) -> (i32, i32) {
    %c0_i32 = arith.constant 0 : i32
    %c0_i32_0 = arith.constant 0 : i32
    %c0_i32_1 = arith.constant 0 : i32
    return %c0_i32, %c0_i32_0 : i32, i32
  }
  func.func @transform_3(%arg0: i32) -> (i32, i32) {
    %c0_i32 = arith.constant 0 : i32
    %c0_i32_0 = arith.constant 0 : i32
    return %c0_i32, %arg0 : i32, i32
  }
}

module attributes {stable_mosaic.version = 11 : i64} {
  func.func @_mm_bias_act_kernel(%arg0: i32, %arg1: memref<16x64xf32, #tpu.memory_space<vmem>>, %arg2: memref<64x256xf32, #tpu.memory_space<vmem>>, %arg3: memref<16x1xf32, #tpu.memory_space<vmem>>, %arg4: memref<16x256xf32, #tpu.memory_space<vmem>>) attributes {dimension_semantics = [#tpu.dimension_semantics<parallel>], iteration_bounds = array<i64: 1>, scalar_prefetch = 0 : i64, scratch_operands = 0 : i64, tpu.core_type = #tpu.core_type<tc>, window_params = [{pipeline_mode = #tpu.pipeline_mode<synchronous>, transform_indices = @transform_0, window_bounds = array<i64: 16, 64>}, {transform_indices = @transform_1, window_bounds = array<i64: 64, 256>}, {pipeline_mode = #tpu.pipeline_mode<synchronous>, transform_indices = @transform_2, window_bounds = array<i64: 16, 1>}, {transform_indices = @transform_3, window_bounds = array<i64: 16, 256>}]} {
    %c0 = arith.constant 0 : index
    %c0_0 = arith.constant 0 : index
    %0 = vector.load %arg1[%c0, %c0_0] : memref<16x64xf32, #tpu.memory_space<vmem>>, vector<16x64xf32>
    %c0_1 = arith.constant 0 : index
    %c0_2 = arith.constant 0 : index
    %1 = vector.load %arg2[%c0_1, %c0_2] : memref<64x256xf32, #tpu.memory_space<vmem>>, vector<64x256xf32>
    %cst = arith.constant dense<0.000000e+00> : vector<16x256xf32>
    %2 = tpu.matmul %0, %1, %cst {dimension_numbers = #tpu.dot_dimension_numbers<[1], [0], [0], [1], [0, 0, 1, 1], [], []>} : vector<16x64xf32>, vector<64x256xf32>, vector<16x256xf32> -> vector<16x256xf32>
    %c0_3 = arith.constant 0 : index
    %c0_4 = arith.constant 0 : index
    %3 = vector.load %arg3[%c0_3, %c0_4] : memref<16x1xf32, #tpu.memory_space<vmem>>, vector<16x1xf32>
    %4 = vector.broadcast %3 : vector<16x1xf32> to vector<16x256xf32>
    %5 = arith.addf %2, %4 : vector<16x256xf32>
    %c0_5 = arith.constant 0 : index
    %c0_6 = arith.constant 0 : index
    %6 = vector.load %arg4[%c0_5, %c0_6] : memref<16x256xf32, #tpu.memory_space<vmem>>, vector<16x256xf32>
    tpu.vector_store %arg4[%c0_5, %c0_6], %5 {strides = array<i32>} : memref<16x256xf32, #tpu.memory_space<vmem>>, vector<16x256xf32>,
    return
  }
  func.func @transform_0(%arg0: i32) -> (i32, i32) {
    %c0_i32 = arith.constant 0 : i32
    %c0_i32_0 = arith.constant 0 : i32
    %c0_i32_1 = arith.constant 0 : i32
    return %c0_i32, %c0_i32_0 : i32, i32
  }
  func.func @transform_1(%arg0: i32) -> (i32, i32) {
    %c0_i32 = arith.constant 0 : i32
    %c0_i32_0 = arith.constant 0 : i32
    return %c0_i32, %arg0 : i32, i32
  }
  func.func @transform_2(%arg0: i32) -> (i32, i32) {
    %c0_i32 = arith.constant 0 : i32
    %c0_i32_0 = arith.constant 0 : i32
    %c0_i32_1 = arith.constant 0 : i32
    return %c0_i32, %c0_i32_0 : i32, i32
  }
  func.func @transform_3(%arg0: i32) -> (i32, i32) {
    %c0_i32 = arith.constant 0 : i32
    %c0_i32_0 = arith.constant 0 : i32
    return %c0_i32, %arg0 : i32, i32
  }
}

module attributes {stable_mosaic.version = 11 : i64} {
  func.func @_mm_bias_act_kernel(%arg0: i32, %arg1: memref<4x108xf32, #tpu.memory_space<vmem>>, %arg2: memref<108x512xf32, #tpu.memory_space<vmem>>, %arg3: memref<4x1xf32, #tpu.memory_space<vmem>>, %arg4: memref<4x512xf32, #tpu.memory_space<vmem>>) attributes {dimension_semantics = [#tpu.dimension_semantics<parallel>], iteration_bounds = array<i64: 1>, scalar_prefetch = 0 : i64, scratch_operands = 0 : i64, tpu.core_type = #tpu.core_type<tc>, window_params = [{pipeline_mode = #tpu.pipeline_mode<synchronous>, transform_indices = @transform_0, window_bounds = array<i64: 4, 108>}, {transform_indices = @transform_1, window_bounds = array<i64: 108, 512>}, {pipeline_mode = #tpu.pipeline_mode<synchronous>, transform_indices = @transform_2, window_bounds = array<i64: 4, 1>}, {transform_indices = @transform_3, window_bounds = array<i64: 4, 512>}]} {
    %c0 = arith.constant 0 : index
    %c0_0 = arith.constant 0 : index
    %0 = vector.load %arg1[%c0, %c0_0] : memref<4x108xf32, #tpu.memory_space<vmem>>, vector<4x108xf32>
    %c0_1 = arith.constant 0 : index
    %c0_2 = arith.constant 0 : index
    %1 = vector.load %arg2[%c0_1, %c0_2] : memref<108x512xf32, #tpu.memory_space<vmem>>, vector<108x512xf32>
    %cst = arith.constant dense<0.000000e+00> : vector<4x512xf32>
    %2 = tpu.matmul %0, %1, %cst {dimension_numbers = #tpu.dot_dimension_numbers<[1], [0], [0], [1], [0, 0, 1, 1], [], []>} : vector<4x108xf32>, vector<108x512xf32>, vector<4x512xf32> -> vector<4x512xf32>
    %c0_3 = arith.constant 0 : index
    %c0_4 = arith.constant 0 : index
    %3 = vector.load %arg3[%c0_3, %c0_4] : memref<4x1xf32, #tpu.memory_space<vmem>>, vector<4x1xf32>
    %4 = vector.broadcast %3 : vector<4x1xf32> to vector<4x512xf32>
    %5 = arith.addf %2, %4 : vector<4x512xf32>
    %cst_5 = arith.constant 0.000000e+00 : f32
    %6 = vector.broadcast %cst_5 : f32 to vector<4x512xf32>
    %7 = arith.maximumf %5, %6 : vector<4x512xf32>
    %c0_6 = arith.constant 0 : index
    %c0_7 = arith.constant 0 : index
    %8 = vector.load %arg4[%c0_6, %c0_7] : memref<4x512xf32, #tpu.memory_space<vmem>>, vector<4x512xf32>
    tpu.vector_store %arg4[%c0_6, %c0_7], %7 {strides = array<i32>} : memref<4x512xf32, #tpu.memory_space<vmem>>, vector<4x512xf32>,
    return
  }
  func.func @transform_0(%arg0: i32) -> (i32, i32) {
    %c0_i32 = arith.constant 0 : i32
    %c0_i32_0 = arith.constant 0 : i32
    %c0_i32_1 = arith.constant 0 : i32
    return %c0_i32, %c0_i32_0 : i32, i32
  }
  func.func @transform_1(%arg0: i32) -> (i32, i32) {
    %c0_i32 = arith.constant 0 : i32
    %c0_i32_0 = arith.constant 0 : i32
    return %c0_i32, %arg0 : i32, i32
  }
  func.func @transform_2(%arg0: i32) -> (i32, i32) {
    %c0_i32 = arith.constant 0 : i32
    %c0_i32_0 = arith.constant 0 : i32
    %c0_i32_1 = arith.constant 0 : i32
    return %c0_i32, %c0_i32_0 : i32, i32
  }
  func.func @transform_3(%arg0: i32) -> (i32, i32) {
    %c0_i32 = arith.constant 0 : i32
    %c0_i32_0 = arith.constant 0 : i32
    return %c0_i32, %arg0 : i32, i32
  }
}

module attributes {stable_mosaic.version = 11 : i64} {
  func.func @_mm_bias_act_kernel(%arg0: i32, %arg1: memref<4x36xf32, #tpu.memory_space<vmem>>, %arg2: memref<36x128xf32, #tpu.memory_space<vmem>>, %arg3: memref<4x1xf32, #tpu.memory_space<vmem>>, %arg4: memref<4x128xf32, #tpu.memory_space<vmem>>) attributes {dimension_semantics = [#tpu.dimension_semantics<parallel>], iteration_bounds = array<i64: 1>, scalar_prefetch = 0 : i64, scratch_operands = 0 : i64, tpu.core_type = #tpu.core_type<tc>, window_params = [{pipeline_mode = #tpu.pipeline_mode<synchronous>, transform_indices = @transform_0, window_bounds = array<i64: 4, 36>}, {transform_indices = @transform_1, window_bounds = array<i64: 36, 128>}, {pipeline_mode = #tpu.pipeline_mode<synchronous>, transform_indices = @transform_2, window_bounds = array<i64: 4, 1>}, {transform_indices = @transform_3, window_bounds = array<i64: 4, 128>}]} {
    %c0 = arith.constant 0 : index
    %c0_0 = arith.constant 0 : index
    %0 = vector.load %arg1[%c0, %c0_0] : memref<4x36xf32, #tpu.memory_space<vmem>>, vector<4x36xf32>
    %c0_1 = arith.constant 0 : index
    %c0_2 = arith.constant 0 : index
    %1 = vector.load %arg2[%c0_1, %c0_2] : memref<36x128xf32, #tpu.memory_space<vmem>>, vector<36x128xf32>
    %cst = arith.constant dense<0.000000e+00> : vector<4x128xf32>
    %2 = tpu.matmul %0, %1, %cst {dimension_numbers = #tpu.dot_dimension_numbers<[1], [0], [0], [1], [0, 0, 1, 1], [], []>} : vector<4x36xf32>, vector<36x128xf32>, vector<4x128xf32> -> vector<4x128xf32>
    %c0_3 = arith.constant 0 : index
    %c0_4 = arith.constant 0 : index
    %3 = vector.load %arg3[%c0_3, %c0_4] : memref<4x1xf32, #tpu.memory_space<vmem>>, vector<4x1xf32>
    %4 = vector.broadcast %3 : vector<4x1xf32> to vector<4x128xf32>
    %5 = arith.addf %2, %4 : vector<4x128xf32>
    %6 = arith.negf %5 : vector<4x128xf32>
    %7 = math.exp %6 : vector<4x128xf32>
    %cst_5 = arith.constant 1.000000e+00 : f32
    %8 = vector.broadcast %cst_5 : f32 to vector<4x128xf32>
    %9 = arith.addf %8, %7 : vector<4x128xf32>
    %10 = arith.divf %8, %9 : vector<4x128xf32>
    %11 = arith.mulf %5, %10 : vector<4x128xf32>
    %c0_6 = arith.constant 0 : index
    %c0_7 = arith.constant 0 : index
    %12 = vector.load %arg4[%c0_6, %c0_7] : memref<4x128xf32, #tpu.memory_space<vmem>>, vector<4x128xf32>
    tpu.vector_store %arg4[%c0_6, %c0_7], %11 {strides = array<i32>} : memref<4x128xf32, #tpu.memory_space<vmem>>, vector<4x128xf32>,
    return
  }
  func.func @transform_0(%arg0: i32) -> (i32, i32) {
    %c0_i32 = arith.constant 0 : i32
    %c0_i32_0 = arith.constant 0 : i32
    %c0_i32_1 = arith.constant 0 : i32
    return %c0_i32, %c0_i32_0 : i32, i32
  }
  func.func @transform_1(%arg0: i32) -> (i32, i32) {
    %c0_i32 = arith.constant 0 : i32
    %c0_i32_0 = arith.constant 0 : i32
    return %c0_i32, %arg0 : i32, i32
  }
  func.func @transform_2(%arg0: i32) -> (i32, i32) {
    %c0_i32 = arith.constant 0 : i32
    %c0_i32_0 = arith.constant 0 : i32
    %c0_i32_1 = arith.constant 0 : i32
    return %c0_i32, %c0_i32_0 : i32, i32
  }
  func.func @transform_3(%arg0: i32) -> (i32, i32) {
    %c0_i32 = arith.constant 0 : i32
    %c0_i32_0 = arith.constant 0 : i32
    return %c0_i32, %arg0 : i32, i32
  }
}

module attributes {stable_mosaic.version = 11 : i64} {
  func.func @_mm_bias_act_kernel(%arg0: i32, %arg1: memref<8x180xf32, #tpu.memory_space<vmem>>, %arg2: memref<180x128xf32, #tpu.memory_space<vmem>>, %arg3: memref<8x1xf32, #tpu.memory_space<vmem>>, %arg4: memref<8x128xf32, #tpu.memory_space<vmem>>) attributes {dimension_semantics = [#tpu.dimension_semantics<parallel>], iteration_bounds = array<i64: 1>, scalar_prefetch = 0 : i64, scratch_operands = 0 : i64, tpu.core_type = #tpu.core_type<tc>, window_params = [{pipeline_mode = #tpu.pipeline_mode<synchronous>, transform_indices = @transform_0, window_bounds = array<i64: 8, 180>}, {transform_indices = @transform_1, window_bounds = array<i64: 180, 128>}, {pipeline_mode = #tpu.pipeline_mode<synchronous>, transform_indices = @transform_2, window_bounds = array<i64: 8, 1>}, {transform_indices = @transform_3, window_bounds = array<i64: 8, 128>}]} {
    %c0 = arith.constant 0 : index
    %c0_0 = arith.constant 0 : index
    %0 = vector.load %arg1[%c0, %c0_0] : memref<8x180xf32, #tpu.memory_space<vmem>>, vector<8x180xf32>
    %c0_1 = arith.constant 0 : index
    %c0_2 = arith.constant 0 : index
    %1 = vector.load %arg2[%c0_1, %c0_2] : memref<180x128xf32, #tpu.memory_space<vmem>>, vector<180x128xf32>
    %cst = arith.constant dense<0.000000e+00> : vector<8x128xf32>
    %2 = tpu.matmul %0, %1, %cst {dimension_numbers = #tpu.dot_dimension_numbers<[1], [0], [0], [1], [0, 0, 1, 1], [], []>} : vector<8x180xf32>, vector<180x128xf32>, vector<8x128xf32> -> vector<8x128xf32>
    %c0_3 = arith.constant 0 : index
    %c0_4 = arith.constant 0 : index
    %3 = vector.load %arg3[%c0_3, %c0_4] : memref<8x1xf32, #tpu.memory_space<vmem>>, vector<8x1xf32>
    %4 = vector.broadcast %3 : vector<8x1xf32> to vector<8x128xf32>
    %5 = arith.addf %2, %4 : vector<8x128xf32>
    %cst_5 = arith.constant 0.000000e+00 : f32
    %6 = vector.broadcast %cst_5 : f32 to vector<8x128xf32>
    %7 = arith.maximumf %5, %6 : vector<8x128xf32>
    %c0_6 = arith.constant 0 : index
    %c0_7 = arith.constant 0 : index
    %8 = vector.load %arg4[%c0_6, %c0_7] : memref<8x128xf32, #tpu.memory_space<vmem>>, vector<8x128xf32>
    tpu.vector_store %arg4[%c0_6, %c0_7], %7 {strides = array<i32>} : memref<8x128xf32, #tpu.memory_space<vmem>>, vector<8x128xf32>,
    return
  }
  func.func @transform_0(%arg0: i32) -> (i32, i32) {
    %c0_i32 = arith.constant 0 : i32
    %c0_i32_0 = arith.constant 0 : i32
    %c0_i32_1 = arith.constant 0 : i32
    return %c0_i32, %c0_i32_0 : i32, i32
  }
  func.func @transform_1(%arg0: i32) -> (i32, i32) {
    %c0_i32 = arith.constant 0 : i32
    %c0_i32_0 = arith.constant 0 : i32
    return %c0_i32, %arg0 : i32, i32
  }
  func.func @transform_2(%arg0: i32) -> (i32, i32) {
    %c0_i32 = arith.constant 0 : i32
    %c0_i32_0 = arith.constant 0 : i32
    %c0_i32_1 = arith.constant 0 : i32
    return %c0_i32, %c0_i32_0 : i32, i32
  }
  func.func @transform_3(%arg0: i32) -> (i32, i32) {
    %c0_i32 = arith.constant 0 : i32
    %c0_i32_0 = arith.constant 0 : i32
    return %c0_i32, %arg0 : i32, i32
  }
}

module attributes {stable_mosaic.version = 11 : i64} {
  func.func @_mm_bias_act_kernel(%arg0: i32, %arg1: memref<8x72xf32, #tpu.memory_space<vmem>>, %arg2: memref<72x128xf32, #tpu.memory_space<vmem>>, %arg3: memref<8x1xf32, #tpu.memory_space<vmem>>, %arg4: memref<8x128xf32, #tpu.memory_space<vmem>>) attributes {dimension_semantics = [#tpu.dimension_semantics<parallel>], iteration_bounds = array<i64: 1>, scalar_prefetch = 0 : i64, scratch_operands = 0 : i64, tpu.core_type = #tpu.core_type<tc>, window_params = [{pipeline_mode = #tpu.pipeline_mode<synchronous>, transform_indices = @transform_0, window_bounds = array<i64: 8, 72>}, {transform_indices = @transform_1, window_bounds = array<i64: 72, 128>}, {pipeline_mode = #tpu.pipeline_mode<synchronous>, transform_indices = @transform_2, window_bounds = array<i64: 8, 1>}, {transform_indices = @transform_3, window_bounds = array<i64: 8, 128>}]} {
    %c0 = arith.constant 0 : index
    %c0_0 = arith.constant 0 : index
    %0 = vector.load %arg1[%c0, %c0_0] : memref<8x72xf32, #tpu.memory_space<vmem>>, vector<8x72xf32>
    %c0_1 = arith.constant 0 : index
    %c0_2 = arith.constant 0 : index
    %1 = vector.load %arg2[%c0_1, %c0_2] : memref<72x128xf32, #tpu.memory_space<vmem>>, vector<72x128xf32>
    %cst = arith.constant dense<0.000000e+00> : vector<8x128xf32>
    %2 = tpu.matmul %0, %1, %cst {dimension_numbers = #tpu.dot_dimension_numbers<[1], [0], [0], [1], [0, 0, 1, 1], [], []>} : vector<8x72xf32>, vector<72x128xf32>, vector<8x128xf32> -> vector<8x128xf32>
    %c0_3 = arith.constant 0 : index
    %c0_4 = arith.constant 0 : index
    %3 = vector.load %arg3[%c0_3, %c0_4] : memref<8x1xf32, #tpu.memory_space<vmem>>, vector<8x1xf32>
    %4 = vector.broadcast %3 : vector<8x1xf32> to vector<8x128xf32>
    %5 = arith.addf %2, %4 : vector<8x128xf32>
    %6 = arith.negf %5 : vector<8x128xf32>
    %7 = math.exp %6 : vector<8x128xf32>
    %cst_5 = arith.constant 1.000000e+00 : f32
    %8 = vector.broadcast %cst_5 : f32 to vector<8x128xf32>
    %9 = arith.addf %8, %7 : vector<8x128xf32>
    %10 = arith.divf %8, %9 : vector<8x128xf32>
    %11 = arith.mulf %5, %10 : vector<8x128xf32>
    %c0_6 = arith.constant 0 : index
    %c0_7 = arith.constant 0 : index
    %12 = vector.load %arg4[%c0_6, %c0_7] : memref<8x128xf32, #tpu.memory_space<vmem>>, vector<8x128xf32>
    tpu.vector_store %arg4[%c0_6, %c0_7], %11 {strides = array<i32>} : memref<8x128xf32, #tpu.memory_space<vmem>>, vector<8x128xf32>,
    return
  }
  func.func @transform_0(%arg0: i32) -> (i32, i32) {
    %c0_i32 = arith.constant 0 : i32
    %c0_i32_0 = arith.constant 0 : i32
    %c0_i32_1 = arith.constant 0 : i32
    return %c0_i32, %c0_i32_0 : i32, i32
  }
  func.func @transform_1(%arg0: i32) -> (i32, i32) {
    %c0_i32 = arith.constant 0 : i32
    %c0_i32_0 = arith.constant 0 : i32
    return %c0_i32, %arg0 : i32, i32
  }
  func.func @transform_2(%arg0: i32) -> (i32, i32) {
    %c0_i32 = arith.constant 0 : i32
    %c0_i32_0 = arith.constant 0 : i32
    %c0_i32_1 = arith.constant 0 : i32
    return %c0_i32, %c0_i32_0 : i32, i32
  }
  func.func @transform_3(%arg0: i32) -> (i32, i32) {
    %c0_i32 = arith.constant 0 : i32
    %c0_i32_0 = arith.constant 0 : i32
    return %c0_i32, %arg0 : i32, i32
  }
}

module attributes {stable_mosaic.version = 11 : i64} {
  func.func @_mm_bias_act_kernel(%arg0: i32, %arg1: memref<4x100xf32, #tpu.memory_space<vmem>>, %arg2: memref<100x128xf32, #tpu.memory_space<vmem>>, %arg3: memref<4x1xf32, #tpu.memory_space<vmem>>, %arg4: memref<4x128xf32, #tpu.memory_space<vmem>>) attributes {dimension_semantics = [#tpu.dimension_semantics<parallel>], iteration_bounds = array<i64: 1>, scalar_prefetch = 0 : i64, scratch_operands = 0 : i64, tpu.core_type = #tpu.core_type<tc>, window_params = [{pipeline_mode = #tpu.pipeline_mode<synchronous>, transform_indices = @transform_0, window_bounds = array<i64: 4, 100>}, {transform_indices = @transform_1, window_bounds = array<i64: 100, 128>}, {pipeline_mode = #tpu.pipeline_mode<synchronous>, transform_indices = @transform_2, window_bounds = array<i64: 4, 1>}, {transform_indices = @transform_3, window_bounds = array<i64: 4, 128>}]} {
    %c0 = arith.constant 0 : index
    %c0_0 = arith.constant 0 : index
    %0 = vector.load %arg1[%c0, %c0_0] : memref<4x100xf32, #tpu.memory_space<vmem>>, vector<4x100xf32>
    %c0_1 = arith.constant 0 : index
    %c0_2 = arith.constant 0 : index
    %1 = vector.load %arg2[%c0_1, %c0_2] : memref<100x128xf32, #tpu.memory_space<vmem>>, vector<100x128xf32>
    %cst = arith.constant dense<0.000000e+00> : vector<4x128xf32>
    %2 = tpu.matmul %0, %1, %cst {dimension_numbers = #tpu.dot_dimension_numbers<[1], [0], [0], [1], [0, 0, 1, 1], [], []>} : vector<4x100xf32>, vector<100x128xf32>, vector<4x128xf32> -> vector<4x128xf32>
    %c0_3 = arith.constant 0 : index
    %c0_4 = arith.constant 0 : index
    %3 = vector.load %arg3[%c0_3, %c0_4] : memref<4x1xf32, #tpu.memory_space<vmem>>, vector<4x1xf32>
    %4 = vector.broadcast %3 : vector<4x1xf32> to vector<4x128xf32>
    %5 = arith.addf %2, %4 : vector<4x128xf32>
    %6 = arith.negf %5 : vector<4x128xf32>
    %7 = math.exp %6 : vector<4x128xf32>
    %cst_5 = arith.constant 1.000000e+00 : f32
    %8 = vector.broadcast %cst_5 : f32 to vector<4x128xf32>
    %9 = arith.addf %8, %7 : vector<4x128xf32>
    %10 = arith.divf %8, %9 : vector<4x128xf32>
    %11 = arith.mulf %5, %10 : vector<4x128xf32>
    %c0_6 = arith.constant 0 : index
    %c0_7 = arith.constant 0 : index
    %12 = vector.load %arg4[%c0_6, %c0_7] : memref<4x128xf32, #tpu.memory_space<vmem>>, vector<4x128xf32>
    tpu.vector_store %arg4[%c0_6, %c0_7], %11 {strides = array<i32>} : memref<4x128xf32, #tpu.memory_space<vmem>>, vector<4x128xf32>,
    return
  }
  func.func @transform_0(%arg0: i32) -> (i32, i32) {
    %c0_i32 = arith.constant 0 : i32
    %c0_i32_0 = arith.constant 0 : i32
    %c0_i32_1 = arith.constant 0 : i32
    return %c0_i32, %c0_i32_0 : i32, i32
  }
  func.func @transform_1(%arg0: i32) -> (i32, i32) {
    %c0_i32 = arith.constant 0 : i32
    %c0_i32_0 = arith.constant 0 : i32
    return %c0_i32, %arg0 : i32, i32
  }
  func.func @transform_2(%arg0: i32) -> (i32, i32) {
    %c0_i32 = arith.constant 0 : i32
    %c0_i32_0 = arith.constant 0 : i32
    %c0_i32_1 = arith.constant 0 : i32
    return %c0_i32, %c0_i32_0 : i32, i32
  }
  func.func @transform_3(%arg0: i32) -> (i32, i32) {
    %c0_i32 = arith.constant 0 : i32
    %c0_i32_0 = arith.constant 0 : i32
    return %c0_i32, %arg0 : i32, i32
  }
}

module attributes {stable_mosaic.version = 11 : i64} {
  func.func @_mm_bias_act_kernel(%arg0: i32, %arg1: memref<16x252xf32, #tpu.memory_space<vmem>>, %arg2: memref<252x128xf32, #tpu.memory_space<vmem>>, %arg3: memref<16x1xf32, #tpu.memory_space<vmem>>, %arg4: memref<16x128xf32, #tpu.memory_space<vmem>>) attributes {dimension_semantics = [#tpu.dimension_semantics<parallel>], iteration_bounds = array<i64: 1>, scalar_prefetch = 0 : i64, scratch_operands = 0 : i64, tpu.core_type = #tpu.core_type<tc>, window_params = [{pipeline_mode = #tpu.pipeline_mode<synchronous>, transform_indices = @transform_0, window_bounds = array<i64: 16, 252>}, {transform_indices = @transform_1, window_bounds = array<i64: 252, 128>}, {pipeline_mode = #tpu.pipeline_mode<synchronous>, transform_indices = @transform_2, window_bounds = array<i64: 16, 1>}, {transform_indices = @transform_3, window_bounds = array<i64: 16, 128>}]} {
    %c0 = arith.constant 0 : index
    %c0_0 = arith.constant 0 : index
    %0 = vector.load %arg1[%c0, %c0_0] : memref<16x252xf32, #tpu.memory_space<vmem>>, vector<16x252xf32>
    %c0_1 = arith.constant 0 : index
    %c0_2 = arith.constant 0 : index
    %1 = vector.load %arg2[%c0_1, %c0_2] : memref<252x128xf32, #tpu.memory_space<vmem>>, vector<252x128xf32>
    %cst = arith.constant dense<0.000000e+00> : vector<16x128xf32>
    %2 = tpu.matmul %0, %1, %cst {dimension_numbers = #tpu.dot_dimension_numbers<[1], [0], [0], [1], [0, 0, 1, 1], [], []>} : vector<16x252xf32>, vector<252x128xf32>, vector<16x128xf32> -> vector<16x128xf32>
    %c0_3 = arith.constant 0 : index
    %c0_4 = arith.constant 0 : index
    %3 = vector.load %arg3[%c0_3, %c0_4] : memref<16x1xf32, #tpu.memory_space<vmem>>, vector<16x1xf32>
    %4 = vector.broadcast %3 : vector<16x1xf32> to vector<16x128xf32>
    %5 = arith.addf %2, %4 : vector<16x128xf32>
    %cst_5 = arith.constant 0.000000e+00 : f32
    %6 = vector.broadcast %cst_5 : f32 to vector<16x128xf32>
    %7 = arith.maximumf %5, %6 : vector<16x128xf32>
    %c0_6 = arith.constant 0 : index
    %c0_7 = arith.constant 0 : index
    %8 = vector.load %arg4[%c0_6, %c0_7] : memref<16x128xf32, #tpu.memory_space<vmem>>, vector<16x128xf32>
    tpu.vector_store %arg4[%c0_6, %c0_7], %7 {strides = array<i32>} : memref<16x128xf32, #tpu.memory_space<vmem>>, vector<16x128xf32>,
    return
  }
  func.func @transform_0(%arg0: i32) -> (i32, i32) {
    %c0_i32 = arith.constant 0 : i32
    %c0_i32_0 = arith.constant 0 : i32
    %c0_i32_1 = arith.constant 0 : i32
    return %c0_i32, %c0_i32_0 : i32, i32
  }
  func.func @transform_1(%arg0: i32) -> (i32, i32) {
    %c0_i32 = arith.constant 0 : i32
    %c0_i32_0 = arith.constant 0 : i32
    return %c0_i32, %arg0 : i32, i32
  }
  func.func @transform_2(%arg0: i32) -> (i32, i32) {
    %c0_i32 = arith.constant 0 : i32
    %c0_i32_0 = arith.constant 0 : i32
    %c0_i32_1 = arith.constant 0 : i32
    return %c0_i32, %c0_i32_0 : i32, i32
  }
  func.func @transform_3(%arg0: i32) -> (i32, i32) {
    %c0_i32 = arith.constant 0 : i32
    %c0_i32_0 = arith.constant 0 : i32
    return %c0_i32, %arg0 : i32, i32
  }
}

</mosaic_0001>

<bundles_post_ra>
// kernel: short_bifpn_forward.9
= control target key start
LH: loop header
LB: loop body
LE: loop exit
PB: predicated region body
PF: predicated region fallthrough
CT: control target
= control target key end

     0   :  { %v177_v2 = vmov 0   ;;  %vm44_vm0 = vcmask 130048   ;;  %s240_s1 = inlined_call_operand.vmem [shape: f32[16,128], index: 1, kind: input, shape index: {}]   ;;  %s241_s0 = inlined_call_operand.vmem [shape: f32[32,16], index: 0, kind: input, shape index: {}]   ;;  %s242_s2 = inlined_call_operand.vmem [shape: f32[32,1], index: 2, kind: input, shape index: {}]   ;;  %s243_s3 = inlined_call_operand.vmem [shape: f32[32,128], index: 3, kind: output, shape index: {}]  }
   0x1   :  { %v19_v0 = vld [vmem:[%s240_s1 + $0x8] sm:$0xff]  ;;  %v18_v1 = vld [vmem:[%s240_s1] sm:$0xff]  ;;  %176 = vset.pattern.permute.xlu1 %v177_v2  ;;  %175 = vset.pattern.permute.xlu0 %v177_v2  ;;  %v16_v4 = vld [vmem:[%s241_s0 + $0x10] sm:$0xff] }
   0x2   :  { %160 = vmatprep.subr.mxu0 %v19_v0  ;;  %170 = vmatprep.subr.mxu1 %v19_v0  ;;  %v14_v3 = vld [vmem:[%s241_s0] sm:$0xff]  ;;  %v15_v5 = vld [vmem:[%s241_s0 + $0x8] sm:$0xff]  ;;  %v17_v6 = vld [vmem:[%s241_s0 + $0x18] sm:$0xff] }
   0x3   :  { %161 = vmatpush3.msra.mxu0 %v19_v0  ;;  %172 = vmatpush3.msra.mxu1 %v19_v0  ;;  %v22_v7 = vld [vmem:[%s242_s2 + $0x10] sm:$0xff]  ;;  %v20_v8 = vld [vmem:[%s242_s2] sm:$0xff]  ;;  %v23_v9 = vld [vmem:[%s242_s2 + $0x18] sm:$0xff] }
   0x4   :  { %162 = vmatprep.subr.mxu0 %v18_v1  ;;  %171 = vmatprep.subr.mxu1 %v18_v1  ;;  %v21_v10 = vld [vmem:[%s242_s2 + $0x8] sm:$0xff] }
   0x5   :  { %163 = vmatpush3.msra.mxu0 %v18_v1  ;;  %173 = vmatpush3.msra.mxu1 %v18_v1 }
   0x6   :  { %164 = vmatprep.mubr.msk.f32.mxu0 %vm44_vm0, %v14_v3  ;;  %167 = vmatprep.mubr.msk.f32.mxu1 %vm44_vm0, %v16_v4 }
   0x7   :  { %165 = vmatmul.mubr.msk.f32.vlgmr.msra.gmra.mxu0 %vm44_vm0, %v15_v5  ;;  %168 = vmatmul.mubr.msk.f32.vlgmr.msra.gmra.mxu1 %vm44_vm0, %v17_v6 }
   0x8   :  { %36 = vperm.xlu1 %176, %v22_v7   ;;  %26 = vperm.xlu0 %175, %v20_v8  }
   0xc   :  { %41 = vperm.xlu1 %176, %v23_v9   ;;  %31 = vperm.xlu0 %175, %v21_v10  }
  0x83   :  { %v37_v11 = vpop.permute.xlu1 %36  ;;  %v27_v12 = vpop.permute.xlu0 %26 }
  0x87   :  { %v42_v13 = vpop.permute.xlu1 %41  ;;  %v32_v14 = vpop.permute.xlu0 %31 }
  0xc7   :  { %v166_v15 = vpop.f32.mrf.mxu0  ;;  %v169_v16 = vpop.f32.mrf.mxu1 }
  0xc8   :  { %v129_v17 = vadd.f32 %v166_v15, %v32_v14  ;;  %v139_v18 = vadd.f32 %v169_v16, %v42_v13 }
  0xc9   :  { %v123_v19 = vpop.f32.mrf.mxu0  ;;  %v133_v20 = vpop.f32.mrf.mxu1 }
  0xca   :  { %143 = vst [vmem:[%s243_s3 + $0x8] sm:$0xff] %v129_v17  ;;  %145 = vst [vmem:[%s243_s3 + $0x18] sm:$0xff] %v139_v18  ;;  %v124_v21 = vadd.f32 %v123_v19, %v27_v12  ;;  %v134_v22 = vadd.f32 %v133_v20, %v37_v11 }
  0xcc   :  { %142 = vst [vmem:[%s243_s3] sm:$0xff] %v124_v21  ;;  %144 = vst [vmem:[%s243_s3 + $0x10] sm:$0xff] %v134_v22 }

// kernel: short_bifpn_forward.10
= control target key start
LH: loop header
LB: loop body
LE: loop exit
PB: predicated region body
PF: predicated region fallthrough
CT: control target
= control target key end

     0   :  { %v133_v0 = vmov 0.0   ;;  %v134_v3 = vmov 0   ;;  %vm49_vm0 = vcmask 719872   ;;  %s275_s1 = inlined_call_operand.vmem [shape: f32[216,128], index: 1, kind: input, shape index: {}]   ;;  %s276_s0 = inlined_call_operand.vmem [shape: f32[8,216], index: 0, kind: input, shape index: {}]   ;;  %s277_s2 = inlined_call_operand.vmem [shape: f32[8,1], index: 2, kind: input, shape index: {}]   ;;  %s278_s3 = inlined_call_operand.vmem [shape: f32[8,128], index: 3, kind: output, shape index: {}]  }
   0x1   :  { %53 = vmatprep.subr.mxu0 %v133_v0  ;;  %v31_v1 = vld [vmem:[%s275_s1 + $0x78] sm:$0xff]  ;;  %v30_v2 = vld [vmem:[%s275_s1 + $0x70] sm:$0xff]  ;;  %132 = vset.pattern.permute.xlu0 %v134_v3  ;;  %v29_v4 = vld [vmem:[%s275_s1 + $0x68] sm:$0xff] }
   0x2   :  { %54 = vmatpush1.msra.mxu0 %v31_v1  ;;  %v28_v5 = vld [vmem:[%s275_s1 + $0x60] sm:$0xff]  ;;  %v27_v6 = vld [vmem:[%s275_s1 + $0x58] sm:$0xff]  ;;  %v26_v7 = vld [vmem:[%s275_s1 + $0x50] sm:$0xff] }
   0x3   :  { %55 = vmatprep.subr.mxu0 %v133_v0  ;;  %v15_v8 = vld [vmem:[%s276_s0 + $0x8] sm:$0xff]  ;;  %v43_v9 = vld [vmem:[%s277_s2] sm:$0xff]  ;;  %v23_v12 = vld [vmem:[%s275_s1 + $0x38] sm:$0xff] }
   0x4   :  { %56 = vmatpush1.msra.mxu0 %v30_v2  ;;  %v25_v10 = vld [vmem:[%s275_s1 + $0x48] sm:$0xff]  ;;  %129 = vmatprep.mubr.msk.f32.mxu0 %vm49_vm0, %v15_v8  ;;  %v24_v11 = vld [vmem:[%s275_s1 + $0x40] sm:$0xff]  ;;  %v22_v13 = vld [vmem:[%s275_s1 + $0x30] sm:$0xff] }
   0x5   :  { %57 = vmatprep.subr.mxu0 %v133_v0  ;;  %46 = vperm.xlu0 %132, %v43_v9   ;;  %v21_v14 = vld [vmem:[%s275_s1 + $0x28] sm:$0xff]  ;;  %v20_v15 = vld [vmem:[%s275_s1 + $0x20] sm:$0xff]  ;;  %v19_v16 = vld [vmem:[%s275_s1 + $0x18] sm:$0xff] }
   0x6   :  { %58 = vmatpush1.msra.mxu0 %v29_v4  ;;  %v18_v17 = vld [vmem:[%s275_s1 + $0x10] sm:$0xff]  ;;  %v17_v18 = vld [vmem:[%s275_s1 + $0x8] sm:$0xff]  ;;  %v16_v19 = vld [vmem:[%s275_s1] sm:$0xff] }
   0x7   :  { %59 = vmatprep.subr.mxu0 %v133_v0  ;;  %v42_v20 = vld [vmem:[%s275_s1 + $0xd0] sm:$0xff]  ;;  %v41_v21 = vld [vmem:[%s275_s1 + $0xc8] sm:$0xff]  ;;  %v40_v22 = vld [vmem:[%s275_s1 + $0xc0] sm:$0xff] }
   0x8   :  { %60 = vmatpush1.msra.mxu0 %v28_v5  ;;  %v39_v23 = vld [vmem:[%s275_s1 + $0xb8] sm:$0xff]  ;;  %v38_v24 = vld [vmem:[%s275_s1 + $0xb0] sm:$0xff]  ;;  %v37_v25 = vld [vmem:[%s275_s1 + $0xa8] sm:$0xff] }
   0x9   :  { %61 = vmatprep.subr.mxu0 %v133_v0  ;;  %v36_v26 = vld [vmem:[%s275_s1 + $0xa0] sm:$0xff]  ;;  %v35_v27 = vld [vmem:[%s275_s1 + $0x98] sm:$0xff]  ;;  %v34_v28 = vld [vmem:[%s275_s1 + $0x90] sm:$0xff] }
   0xa   :  { %62 = vmatpush1.msra.mxu0 %v27_v6  ;;  %v33_v29 = vld [vmem:[%s275_s1 + $0x88] sm:$0xff]  ;;  %v32_v30 = vld [vmem:[%s275_s1 + $0x80] sm:$0xff] }
   0xb   :  { %63 = vmatprep.subr.mxu0 %v133_v0  ;;  %v14_v31 = vld [vmem:[%s276_s0] sm:$0xff] }
   0xc   :  { %64 = vmatpush1.msra.mxu0 %v26_v7 }
   0xd   :  { %65 = vmatprep.subr.mxu0 %v133_v0 }
   0xe   :  { %66 = vmatpush1.msra.mxu0 %v25_v10 }
   0xf   :  { %67 = vmatprep.subr.mxu0 %v133_v0 }
  0x10   :  { %68 = vmatpush1.msra.mxu0 %v24_v11 }
  0x11   :  { %69 = vmatprep.subr.mxu0 %v133_v0 }
  0x12   :  { %70 = vmatpush1.msra.mxu0 %v23_v12 }
  0x13   :  { %71 = vmatprep.subr.mxu0 %v133_v0 }
  0x14   :  { %72 = vmatpush1.msra.mxu0 %v22_v13 }
  0x15   :  { %73 = vmatprep.subr.mxu0 %v133_v0 }
  0x16   :  { %74 = vmatpush1.msra.mxu0 %v21_v14 }
  0x17   :  { %75 = vmatprep.subr.mxu0 %v133_v0 }
  0x18   :  { %76 = vmatpush1.msra.mxu0 %v20_v15 }
  0x19   :  { %77 = vmatprep.subr.mxu0 %v133_v0 }
  0x1a   :  { %78 = vmatpush1.msra.mxu0 %v19_v16 }
  0x1b   :  { %79 = vmatprep.subr.mxu0 %v133_v0 }
  0x1c   :  { %80 = vmatpush1.msra.mxu0 %v18_v17 }
  0x1d   :  { %81 = vmatprep.subr.mxu0 %v133_v0 }
  0x1e   :  { %82 = vmatpush1.msra.mxu0 %v17_v18 }
  0x1f   :  { %83 = vmatprep.subr.mxu0 %v133_v0 }
  0x20   :  { %84 = vmatpush1.msra.mxu0 %v16_v19 }
  0x21   :  { %95 = vmatprep.subr.mxu0 %v133_v0 }
  0x22   :  { %96 = vmatpush2.msra.mxu0 %v42_v20 }
  0x23   :  { %97 = vmatprep.subr.mxu0 %v133_v0 }
  0x24   :  { %98 = vmatpush2.msra.mxu0 %v41_v21 }
  0x25   :  { %99 = vmatprep.subr.mxu0 %v133_v0 }
  0x26   :  { %100 = vmatpush2.msra.mxu0 %v40_v22 }
  0x27   :  { %101 = vmatprep.subr.mxu0 %v133_v0 }
  0x28   :  { %102 = vmatpush2.msra.mxu0 %v39_v23 }
  0x29   :  { %103 = vmatprep.subr.mxu0 %v133_v0 }
  0x2a   :  { %104 = vmatpush2.msra.mxu0 %v38_v24 }
  0x2b   :  { %105 = vmatprep.subr.mxu0 %v133_v0 }
  0x2c   :  { %106 = vmatpush2.msra.mxu0 %v37_v25 }
  0x2d   :  { %107 = vmatprep.subr.mxu0 %v133_v0 }
  0x2e   :  { %108 = vmatpush2.msra.mxu0 %v36_v26 }
  0x2f   :  { %109 = vmatprep.subr.mxu0 %v133_v0 }
  0x30   :  { %110 = vmatpush2.msra.mxu0 %v35_v27 }
  0x31   :  { %111 = vmatprep.subr.mxu0 %v133_v0 }
  0x32   :  { %112 = vmatpush2.msra.mxu0 %v34_v28 }
  0x33   :  { %113 = vmatprep.subr.mxu0 %v133_v0 }
  0x34   :  { %114 = vmatpush2.msra.mxu0 %v33_v29 }
  0x35   :  { %115 = vmatprep.subr.mxu0 %v133_v0 }
  0x36   :  { %116 = vmatpush2.msra.mxu0 %v32_v30 }
  0x37   :  { %118 = vmatmul.mubr.f32.vlgmr.msra.gmra.mxu0 %v14_v31 }
  0x80   :  { %v47_v32 = vpop.permute.xlu0 %46 }
  0xf7   :  { %v119_v33 = vpop.f32.mrf.mxu0 }
  0xf8   :  { %v120_v34 = vadd.f32 %v119_v33, %v47_v32 }
  0xf9   :  { %v121_v35 = vpop.f32.mrf.mxu0 }
  0xfa   :  { %v123_v36 = vmax.f32 %v120_v34, 0.0 }
  0xfc   :  { %124 = vst [vmem:[%s278_s3] sm:$0xff] %v123_v36 }

// kernel: short_bifpn_forward.11
= control target key start
LH: loop header
LB: loop body
LE: loop exit
PB: predicated region body
PF: predicated region fallthrough
CT: control target
= control target key end

     0   :  { %v157_v3 = vmov 0.0   ;;  %vm44_vm0 = vcmask 523264   ;;  %v158_v20 = vmov 0   ;;  %s251_s1 = inlined_call_operand.vmem [shape: f32[64,256], index: 1, kind: input, shape index: {}]   ;;  %s252_s0 = inlined_call_operand.vmem [shape: f32[16,64], index: 0, kind: input, shape index: {}]   ;;  %s253_s2 = inlined_call_operand.vmem [shape: f32[16,1], index: 2, kind: input, shape index: {}]   ;;  %s254_s3 = inlined_call_operand.vmem [shape: f32[16,256], index: 3, kind: output, shape index: {}]  }
   0x1   :  { %v31_v0 = vld [vmem:[%s251_s1 + $0x78] sm:$0xff]  ;;  %v30_v1 = vld [vmem:[%s251_s1 + $0x70] sm:$0xff]  ;;  %v29_v2 = vld [vmem:[%s251_s1 + $0x68] sm:$0xff]  ;;  %115 = vmatprep.mubr.f32.mxu0 %v157_v3  ;;  %121 = vmatprep.mubr.f32.mxu1 %v157_v3 }
   0x2   :  { %67 = vmatprep.subr.mxu0 %v31_v0  ;;  %138 = vmatprep.subr.mxu1 %v31_v0  ;;  %v28_v4 = vld [vmem:[%s251_s1 + $0x60] sm:$0xff]  ;;  %v27_v5 = vld [vmem:[%s251_s1 + $0x58] sm:$0xff]  ;;  %v26_v6 = vld [vmem:[%s251_s1 + $0x50] sm:$0xff] }
   0x3   :  { %68 = vmatpush1.msra.mxu0 %v30_v1  ;;  %146 = vmatpush1.msra.mxu1 %v30_v1  ;;  %v25_v7 = vld [vmem:[%s251_s1 + $0x48] sm:$0xff]  ;;  %v24_v8 = vld [vmem:[%s251_s1 + $0x40] sm:$0xff]  ;;  %v23_v9 = vld [vmem:[%s251_s1 + $0x38] sm:$0xff] }
   0x4   :  { %69 = vmatprep.subr.mxu0 %v29_v2  ;;  %139 = vmatprep.subr.mxu1 %v29_v2  ;;  %v22_v10 = vld [vmem:[%s251_s1 + $0x30] sm:$0xff]  ;;  %v21_v11 = vld [vmem:[%s251_s1 + $0x28] sm:$0xff]  ;;  %v20_v12 = vld [vmem:[%s251_s1 + $0x20] sm:$0xff] }
   0x5   :  { %70 = vmatpush1.msra.mxu0 %v28_v4  ;;  %147 = vmatpush1.msra.mxu1 %v28_v4  ;;  %v19_v13 = vld [vmem:[%s251_s1 + $0x18] sm:$0xff]  ;;  %v18_v14 = vld [vmem:[%s251_s1 + $0x10] sm:$0xff]  ;;  %v17_v15 = vld [vmem:[%s251_s1 + $0x8] sm:$0xff] }
   0x6   :  { %71 = vmatprep.subr.mxu0 %v27_v5  ;;  %140 = vmatprep.subr.mxu1 %v27_v5  ;;  %v16_v16 = vld [vmem:[%s251_s1] sm:$0xff]  ;;  %v15_v18 = vld [vmem:[%s252_s0 + $0x8] sm:$0xff] }
   0x7   :  { %72 = vmatpush1.msra.mxu0 %v26_v6  ;;  %148 = vmatpush1.msra.mxu1 %v26_v6  ;;  %v14_v17 = vld [vmem:[%s252_s0] sm:$0xff]  ;;  %v33_v21 = vld [vmem:[%s253_s2 + $0x8] sm:$0xff] }
   0x8   :  { %73 = vmatprep.subr.mxu0 %v25_v7  ;;  %141 = vmatprep.subr.mxu1 %v25_v7  ;;  %v32_v19 = vld [vmem:[%s253_s2] sm:$0xff] }
   0x9   :  { %74 = vmatpush1.msra.mxu0 %v24_v8  ;;  %149 = vmatpush1.msra.mxu1 %v24_v8 }
   0xa   :  { %75 = vmatprep.subr.mxu0 %v23_v9  ;;  %142 = vmatprep.subr.mxu1 %v23_v9 }
   0xb   :  { %76 = vmatpush1.msra.mxu0 %v22_v10  ;;  %150 = vmatpush1.msra.mxu1 %v22_v10 }
   0xc   :  { %77 = vmatprep.subr.mxu0 %v21_v11  ;;  %143 = vmatprep.subr.mxu1 %v21_v11 }
   0xd   :  { %78 = vmatpush1.msra.mxu0 %v20_v12  ;;  %151 = vmatpush1.msra.mxu1 %v20_v12 }
   0xe   :  { %79 = vmatprep.subr.mxu0 %v19_v13  ;;  %144 = vmatprep.subr.mxu1 %v19_v13 }
   0xf   :  { %80 = vmatpush1.msra.mxu0 %v18_v14  ;;  %152 = vmatpush1.msra.mxu1 %v18_v14 }
  0x10   :  { %81 = vmatprep.subr.mxu0 %v17_v15  ;;  %145 = vmatprep.subr.mxu1 %v17_v15 }
  0x11   :  { %82 = vmatpush1.msra.mxu0 %v16_v16  ;;  %153 = vmatpush1.msra.mxu1 %v16_v16 }
  0x12   :  { %136 = vmatmul.mubr.msk.f32.vlgmr.msra.gmra.mxu0 %vm44_vm0, %v14_v17  ;;  %137 = vmatmul.mubr.msk.f32.vlgmr.msra.gmra.mxu1 %vm44_vm0, %v15_v18 }
  0x13   :  { %156 = vset.pattern.permute.xlu0 %v158_v20 }
  0x14   :  { %36 = vperm.xlu0 %156, %v32_v19  }
  0x18   :  { %41 = vperm.xlu0 %156, %v33_v21  }
  0x8f   :  { %v37_v22 = vpop.permute.xlu0 %36 }
  0x93   :  { %v42_v23 = vpop.permute.xlu0 %41 }
  0xd2   :  { %v117_v24 = vpop.f32.mrf.mxu0  ;;  %v123_v25 = vpop.f32.mrf.mxu1 }
  0xd3   :  { %v118_v26 = vadd.f32 %v117_v24, %v37_v22  ;;  %v124_v27 = vadd.f32 %v123_v25, %v42_v23 }
  0xd4   :  { %v119_v28 = vpop.f32.mrf.mxu0  ;;  %v125_v29 = vpop.f32.mrf.mxu1 }
  0xd5   :  { %128 = vst [vmem:[%s254_s3] sm:$0xff] %v118_v26  ;;  %130 = vst [vmem:[%s254_s3 + $0x10] sm:$0xff] %v124_v27  ;;  %v120_v30 = vadd.f32 %v119_v28, %v37_v22  ;;  %v126_v31 = vadd.f32 %v125_v29, %v42_v23 }
  0xd7   :  { %129 = vst [vmem:[%s254_s3 + $0x8] sm:$0xff] %v120_v30  ;;  %131 = vst [vmem:[%s254_s3 + $0x18] sm:$0xff] %v126_v31 }

// kernel: short_bifpn_forward.12
= control target key start
LH: loop header
LB: loop body
LE: loop exit
PB: predicated region body
PF: predicated region fallthrough
CT: control target
= control target key end

     0   :  { %vm81_vm0 = vcmask 1043456   ;;  %v263_v3 = vmov 0.0   ;;  %vm77_vm1 = vcmask 883712   ;;  %v264_v59 = vmov 0   ;;  %s465_s1 = inlined_call_operand.vmem [shape: f32[108,512], index: 1, kind: input, shape index: {}]   ;;  %s466_s0 = inlined_call_operand.vmem [shape: f32[4,108], index: 0, kind: input, shape index: {}]   ;;  %s467_s2 = inlined_call_operand.vmem [shape: f32[4,1], index: 2, kind: input, shape index: {}]   ;;  %s468_s3 = inlined_call_operand.vmem [shape: f32[4,512], index: 3, kind: output, shape index: {}]  }
   0x1   :  { %v68_v0 = vld [vmem:[%s465_s1 + $0x1a8] sm:$0xf]  ;;  %v70_v1 = vld [vmem:[%s465_s1 + $0x1b8] sm:$0xf]  ;;  %v67_v2 = vld [vmem:[%s465_s1 + $0x1a0] sm:$0xf]  ;;  %158 = vmatprep.mubr.f32.mxu0 %v263_v3  ;;  %229 = vmatprep.mubr.f32.mxu1 %v263_v3 }
   0x2   :  { %254 = vmatprep.subr.msk.mxu0 %vm81_vm0, %v68_v0  ;;  %257 = vmatprep.subr.msk.mxu1 %vm81_vm0, %v70_v1  ;;  %v69_v4 = vld [vmem:[%s465_s1 + $0x1b0] sm:$0xf]  ;;  %v64_v5 = vld [vmem:[%s465_s1 + $0x188] sm:$0xff]  ;;  %v66_v6 = vld [vmem:[%s465_s1 + $0x198] sm:$0xff] }
   0x3   :  { %255 = vmatpush1.msk.msra.mxu0 %vm81_vm0, %v67_v2  ;;  %258 = vmatpush1.msk.msra.mxu1 %vm81_vm0, %v69_v4  ;;  %v63_v7 = vld [vmem:[%s465_s1 + $0x180] sm:$0xff]  ;;  %v65_v8 = vld [vmem:[%s465_s1 + $0x190] sm:$0xff]  ;;  %v60_v9 = vld [vmem:[%s465_s1 + $0x168] sm:$0xff] }
   0x4   :  { %100 = vmatprep.subr.mxu0 %v64_v5  ;;  %171 = vmatprep.subr.mxu1 %v66_v6  ;;  %v62_v10 = vld [vmem:[%s465_s1 + $0x178] sm:$0xff]  ;;  %v59_v11 = vld [vmem:[%s465_s1 + $0x160] sm:$0xff]  ;;  %v61_v12 = vld [vmem:[%s465_s1 + $0x170] sm:$0xff] }
   0x5   :  { %101 = vmatpush1.msra.mxu0 %v63_v7  ;;  %172 = vmatpush1.msra.mxu1 %v65_v8  ;;  %v56_v13 = vld [vmem:[%s465_s1 + $0x148] sm:$0xff]  ;;  %v58_v14 = vld [vmem:[%s465_s1 + $0x158] sm:$0xff]  ;;  %v55_v15 = vld [vmem:[%s465_s1 + $0x140] sm:$0xff] }
   0x6   :  { %102 = vmatprep.subr.mxu0 %v60_v9  ;;  %173 = vmatprep.subr.mxu1 %v62_v10  ;;  %v57_v16 = vld [vmem:[%s465_s1 + $0x150] sm:$0xff]  ;;  %v52_v17 = vld [vmem:[%s465_s1 + $0x128] sm:$0xff]  ;;  %v54_v18 = vld [vmem:[%s465_s1 + $0x138] sm:$0xff] }
   0x7   :  { %103 = vmatpush1.msra.mxu0 %v59_v11  ;;  %174 = vmatpush1.msra.mxu1 %v61_v12  ;;  %v51_v19 = vld [vmem:[%s465_s1 + $0x120] sm:$0xff]  ;;  %v53_v20 = vld [vmem:[%s465_s1 + $0x130] sm:$0xff]  ;;  %v48_v21 = vld [vmem:[%s465_s1 + $0x108] sm:$0xff] }
   0x8   :  { %104 = vmatprep.subr.mxu0 %v56_v13  ;;  %175 = vmatprep.subr.mxu1 %v58_v14  ;;  %v50_v22 = vld [vmem:[%s465_s1 + $0x118] sm:$0xff]  ;;  %v47_v23 = vld [vmem:[%s465_s1 + $0x100] sm:$0xff]  ;;  %v49_v24 = vld [vmem:[%s465_s1 + $0x110] sm:$0xff] }
   0x9   :  { %105 = vmatpush1.msra.mxu0 %v55_v15  ;;  %176 = vmatpush1.msra.mxu1 %v57_v16  ;;  %v44_v25 = vld [vmem:[%s465_s1 + $0xe8] sm:$0xff]  ;;  %v46_v26 = vld [vmem:[%s465_s1 + $0xf8] sm:$0xff]  ;;  %v43_v27 = vld [vmem:[%s465_s1 + $0xe0] sm:$0xff] }
   0xa   :  { %106 = vmatprep.subr.mxu0 %v52_v17  ;;  %177 = vmatprep.subr.mxu1 %v54_v18  ;;  %v45_v28 = vld [vmem:[%s465_s1 + $0xf0] sm:$0xff]  ;;  %v40_v29 = vld [vmem:[%s465_s1 + $0xc8] sm:$0xff]  ;;  %v42_v30 = vld [vmem:[%s465_s1 + $0xd8] sm:$0xff] }
   0xb   :  { %107 = vmatpush1.msra.mxu0 %v51_v19  ;;  %178 = vmatpush1.msra.mxu1 %v53_v20  ;;  %v39_v31 = vld [vmem:[%s465_s1 + $0xc0] sm:$0xff]  ;;  %v41_v32 = vld [vmem:[%s465_s1 + $0xd0] sm:$0xff]  ;;  %v36_v33 = vld [vmem:[%s465_s1 + $0xa8] sm:$0xff] }
   0xc   :  { %108 = vmatprep.subr.mxu0 %v48_v21  ;;  %179 = vmatprep.subr.mxu1 %v50_v22  ;;  %v38_v34 = vld [vmem:[%s465_s1 + $0xb8] sm:$0xff]  ;;  %v35_v35 = vld [vmem:[%s465_s1 + $0xa0] sm:$0xff]  ;;  %v37_v36 = vld [vmem:[%s465_s1 + $0xb0] sm:$0xff] }
   0xd   :  { %109 = vmatpush1.msra.mxu0 %v47_v23  ;;  %180 = vmatpush1.msra.mxu1 %v49_v24  ;;  %v32_v37 = vld [vmem:[%s465_s1 + $0x88] sm:$0xff]  ;;  %v34_v38 = vld [vmem:[%s465_s1 + $0x98] sm:$0xff]  ;;  %v31_v39 = vld [vmem:[%s465_s1 + $0x80] sm:$0xff] }
   0xe   :  { %110 = vmatprep.subr.mxu0 %v44_v25  ;;  %181 = vmatprep.subr.mxu1 %v46_v26  ;;  %v33_v40 = vld [vmem:[%s465_s1 + $0x90] sm:$0xff]  ;;  %v28_v41 = vld [vmem:[%s465_s1 + $0x68] sm:$0xff]  ;;  %v30_v42 = vld [vmem:[%s465_s1 + $0x78] sm:$0xff] }
   0xf   :  { %111 = vmatpush1.msra.mxu0 %v43_v27  ;;  %182 = vmatpush1.msra.mxu1 %v45_v28  ;;  %v27_v43 = vld [vmem:[%s465_s1 + $0x60] sm:$0xff]  ;;  %v29_v44 = vld [vmem:[%s465_s1 + $0x70] sm:$0xff]  ;;  %v24_v45 = vld [vmem:[%s465_s1 + $0x48] sm:$0xff] }
  0x10   :  { %112 = vmatprep.subr.mxu0 %v40_v29  ;;  %183 = vmatprep.subr.mxu1 %v42_v30  ;;  %v26_v46 = vld [vmem:[%s465_s1 + $0x58] sm:$0xff]  ;;  %v23_v47 = vld [vmem:[%s465_s1 + $0x40] sm:$0xff]  ;;  %v25_v48 = vld [vmem:[%s465_s1 + $0x50] sm:$0xff] }
  0x11   :  { %113 = vmatpush1.msra.mxu0 %v39_v31  ;;  %184 = vmatpush1.msra.mxu1 %v41_v32  ;;  %v20_v49 = vld [vmem:[%s465_s1 + $0x28] sm:$0xff]  ;;  %v22_v50 = vld [vmem:[%s465_s1 + $0x38] sm:$0xff]  ;;  %v19_v51 = vld [vmem:[%s465_s1 + $0x20] sm:$0xff] }
  0x12   :  { %114 = vmatprep.subr.mxu0 %v36_v33  ;;  %185 = vmatprep.subr.mxu1 %v38_v34  ;;  %v21_v52 = vld [vmem:[%s465_s1 + $0x30] sm:$0xff]  ;;  %v16_v53 = vld [vmem:[%s465_s1 + $0x8] sm:$0xff]  ;;  %v18_v54 = vld [vmem:[%s465_s1 + $0x18] sm:$0xff] }
  0x13   :  { %115 = vmatpush1.msra.mxu0 %v35_v35  ;;  %186 = vmatpush1.msra.mxu1 %v37_v36  ;;  %v15_v55 = vld [vmem:[%s465_s1] sm:$0xff]  ;;  %v17_v56 = vld [vmem:[%s465_s1 + $0x10] sm:$0xff] }
  0x14   :  { %116 = vmatprep.subr.mxu0 %v32_v37  ;;  %187 = vmatprep.subr.mxu1 %v34_v38  ;;  %v14_v57 = vld [vmem:[%s466_s0] sm:$0xf] }
  0x15   :  { %117 = vmatpush1.msra.mxu0 %v31_v39  ;;  %188 = vmatpush1.msra.mxu1 %v33_v40  ;;  %v71_v58 = vld [vmem:[%s467_s2] sm:$0xf] }
  0x16   :  { %118 = vmatprep.subr.mxu0 %v28_v41  ;;  %189 = vmatprep.subr.mxu1 %v30_v42 }
  0x17   :  { %119 = vmatpush1.msra.mxu0 %v27_v43  ;;  %190 = vmatpush1.msra.mxu1 %v29_v44 }
  0x18   :  { %120 = vmatprep.subr.mxu0 %v24_v45  ;;  %191 = vmatprep.subr.mxu1 %v26_v46 }
  0x19   :  { %121 = vmatpush1.msra.mxu0 %v23_v47  ;;  %192 = vmatpush1.msra.mxu1 %v25_v48 }
  0x1a   :  { %122 = vmatprep.subr.mxu0 %v20_v49  ;;  %193 = vmatprep.subr.mxu1 %v22_v50 }
  0x1b   :  { %123 = vmatpush1.msra.mxu0 %v19_v51  ;;  %194 = vmatpush1.msra.mxu1 %v21_v52 }
  0x1c   :  { %124 = vmatprep.subr.mxu0 %v16_v53  ;;  %195 = vmatprep.subr.mxu1 %v18_v54 }
  0x1d   :  { %125 = vmatpush1.msra.mxu0 %v15_v55  ;;  %196 = vmatpush1.msra.mxu1 %v17_v56 }
  0x1e   :  { %256 = vmatmul.mubr.msk.f32.vlgmr.msra.gmra.mxu0 %vm77_vm1, %v14_v57  ;;  %259 = vmatmul.mubr.msk.f32.vlgmr.msra.gmra.mxu1 %vm77_vm1, %v14_v57 }
  0x1f   :  { %262 = vset.pattern.permute.xlu0 %v264_v59 }
  0x20   :  { %74 = vperm.xlu0 %262, %v71_v58  }
  0x9b   :  { %v75_v60 = vpop.permute.xlu0 %74 }
  0xde   :  { %v160_v61 = vpop.f32.mrf.mxu0  ;;  %v231_v62 = vpop.f32.mrf.mxu1 }
  0xdf   :  { %v161_v63 = vadd.f32 %v160_v61, %v75_v60  ;;  %v232_v0 = vadd.f32 %v231_v62, %v75_v60 }
  0xe0   :  { %v162_v1 = vpop.f32.mrf.mxu0  ;;  %v233_v2 = vpop.f32.mrf.mxu1 }
  0xe1   :  { %v163_v3 = vadd.f32 %v162_v1, %v75_v60  ;;  %v234_v4 = vadd.f32 %v233_v2, %v75_v60  ;;  %v236_v5 = vmax.f32 %v161_v63, 0.0  ;;  %v238_v6 = vmax.f32 %v232_v0, 0.0 }
  0xe3   :  { %v237_v7 = vmax.f32 %v163_v3, 0.0  ;;  %v239_v8 = vmax.f32 %v234_v4, 0.0 }
  0xe5   :  { %v244_v9 = vcombine.low %v236_v5, %v237_v7  ;;  %v245_v10 = vcombine.low %v238_v6, %v239_v8 }
  0xe7   :  { %248 = vst [vmem:[%s468_s3] sm:$0xff] %v244_v9  ;;  %249 = vst [vmem:[%s468_s3 + $0x8] sm:$0xff] %v245_v10 }

// kernel: short_bifpn_forward.13
= control target key start
LH: loop header
LB: loop body
LE: loop exit
PB: predicated region body
PF: predicated region fallthrough
CT: control target
= control target key end

     0   :  { %vm30_vm0 = vcmask 1043456   ;;  %v146_v0 = vmov 0.0   ;;  %vm147_vm1 = vmmov 0   ;;  %v148_v3 = vmov 0   ;;  %s193_s1 = inlined_call_operand.vmem [shape: f32[36,128], index: 1, kind: input, shape index: {}]   ;;  %s194_s2 = inlined_call_operand.vmem [shape: f32[4,1], index: 2, kind: input, shape index: {}]   ;;  %s195_s0 = inlined_call_operand.vmem [shape: f32[4,36], index: 0, kind: input, shape index: {}]   ;;  %s196_s3 = inlined_call_operand.vmem [shape: f32[4,128], index: 3, kind: output, shape index: {}]  }
   0x1   :  { %125 = vmatprep.subr.mxu0 %v146_v0  ;;  %v19_v1 = vld [vmem:[%s193_s1 + $0x20] sm:$0xf]  ;;  %v18_v2 = vld [vmem:[%s193_s1 + $0x18] sm:$0xff]  ;;  %135 = vmatprep.mubr.msk.f32.mxu0 %vm147_vm1, %v146_v0  ;;  %v17_v4 = vld [vmem:[%s193_s1 + $0x10] sm:$0xff]  ;;  %vm26_vm2 = vcmask 293888  }
   0x2   :  { %126 = vmatpush3.msk.msra.mxu0 %vm30_vm0, %v19_v1  ;;  %141 = vset.pattern.permute.xlu0 %v148_v3  ;;  %v20_v5 = vld [vmem:[%s194_s2] sm:$0xf]  ;;  %v16_v6 = vld [vmem:[%s193_s1 + $0x8] sm:$0xff] }
   0x3   :  { %127 = vmatprep.subr.mxu0 %v146_v0  ;;  %23 = vperm.xlu0 %141, %v20_v5   ;;  %v15_v7 = vld [vmem:[%s193_s1] sm:$0xff] }
   0x4   :  { %128 = vmatpush3.msra.mxu0 %v18_v2  ;;  %v14_v8 = vld [vmem:[%s195_s0] sm:$0xf] }
   0x5   :  { %129 = vmatprep.subr.mxu0 %v146_v0 }
   0x6   :  { %130 = vmatpush3.msra.mxu0 %v17_v4 }
   0x7   :  { %131 = vmatprep.subr.mxu0 %v146_v0 }
   0x8   :  { %132 = vmatpush3.msra.mxu0 %v16_v6 }
   0x9   :  { %133 = vmatprep.subr.mxu0 %v146_v0 }
   0xa   :  { %134 = vmatpush3.msra.mxu0 %v15_v7 }
   0xb   :  { %136 = vmatmul.mubr.msk.f32.vlgmr.msra.gmra.mxu0 %vm26_vm2, %v14_v8 }
  0x7e   :  { %v24_v9 = vpop.permute.xlu0 %23 }
  0xcb   :  { %v100_v10 = vpop.f32.mrf.mxu0 }
  0xcc   :  { %v101_v11 = vadd.f32 %v100_v10, %v24_v9 }
  0xcd   :  { %v137_v12 = vpop.f32.mrf.mxu0 }
  0xce   :  { %v118_v13 = vmul.f32 -1.442695, %v101_v11 }
  0xd0   :  { %142 = vpow2.f32 %v118_v13 }
  0xdd   :  { %v143_v14 = vpop.eup %142 }
  0xde   :  { %v107_v15 = vadd.f32 1.0, %v143_v14 }
  0xe0   :  { %144 = vrcp.f32 %v107_v15 }
  0xed   :  { %v145_v16 = vpop.eup %144 }
  0xee   :  { %v110_v17 = vmul.f32 %v145_v16, %v101_v11 }
  0xf0   :  { %111 = vst [vmem:[%s196_s3] sm:$0xf] %v110_v17 }

// kernel: short_bifpn_forward.14
= control target key start
LH: loop header
LB: loop body
LE: loop exit
PB: predicated region body
PF: predicated region fallthrough
CT: control target
= control target key end

     0   :  { %v134_v0 = vmov 0.0   ;;  %v135_v3 = vmov 0   ;;  %vm45_vm0 = vcmask 424960   ;;  %vm49_vm1 = vcmask 1043456   ;;  %s260_s1 = inlined_call_operand.vmem [shape: f32[180,128], index: 1, kind: input, shape index: {}]   ;;  %s261_s0 = inlined_call_operand.vmem [shape: f32[8,180], index: 0, kind: input, shape index: {}]   ;;  %s262_s2 = inlined_call_operand.vmem [shape: f32[8,1], index: 2, kind: input, shape index: {}]   ;;  %s263_s3 = inlined_call_operand.vmem [shape: f32[8,128], index: 3, kind: output, shape index: {}]  }
   0x1   :  { %53 = vmatprep.subr.mxu0 %v134_v0  ;;  %v31_v1 = vld [vmem:[%s260_s1 + $0x78] sm:$0xff]  ;;  %v30_v2 = vld [vmem:[%s260_s1 + $0x70] sm:$0xff]  ;;  %133 = vset.pattern.permute.xlu0 %v135_v3  ;;  %v29_v4 = vld [vmem:[%s260_s1 + $0x68] sm:$0xff] }
   0x2   :  { %54 = vmatpush1.msra.mxu0 %v31_v1  ;;  %v28_v5 = vld [vmem:[%s260_s1 + $0x60] sm:$0xff]  ;;  %v27_v6 = vld [vmem:[%s260_s1 + $0x58] sm:$0xff]  ;;  %v15_v7 = vld [vmem:[%s261_s0 + $0x8] sm:$0xff] }
   0x3   :  { %55 = vmatprep.subr.mxu0 %v134_v0  ;;  %v26_v8 = vld [vmem:[%s260_s1 + $0x50] sm:$0xff]  ;;  %130 = vmatprep.mubr.msk.f32.mxu0 %vm45_vm0, %v15_v7  ;;  %v39_v9 = vld [vmem:[%s262_s2] sm:$0xff]  ;;  %v25_v10 = vld [vmem:[%s260_s1 + $0x48] sm:$0xff] }
   0x4   :  { %56 = vmatpush1.msra.mxu0 %v30_v2  ;;  %42 = vperm.xlu0 %133, %v39_v9   ;;  %v24_v11 = vld [vmem:[%s260_s1 + $0x40] sm:$0xff]  ;;  %v23_v12 = vld [vmem:[%s260_s1 + $0x38] sm:$0xff]  ;;  %v22_v13 = vld [vmem:[%s260_s1 + $0x30] sm:$0xff] }
   0x5   :  { %57 = vmatprep.subr.mxu0 %v134_v0  ;;  %v21_v14 = vld [vmem:[%s260_s1 + $0x28] sm:$0xff]  ;;  %v20_v15 = vld [vmem:[%s260_s1 + $0x20] sm:$0xff]  ;;  %v19_v16 = vld [vmem:[%s260_s1 + $0x18] sm:$0xff] }
   0x6   :  { %58 = vmatpush1.msra.mxu0 %v29_v4  ;;  %v18_v17 = vld [vmem:[%s260_s1 + $0x10] sm:$0xff]  ;;  %v17_v18 = vld [vmem:[%s260_s1 + $0x8] sm:$0xff]  ;;  %v16_v19 = vld [vmem:[%s260_s1] sm:$0xff] }
   0x7   :  { %59 = vmatprep.subr.mxu0 %v134_v0  ;;  %v38_v20 = vld [vmem:[%s260_s1 + $0xb0] sm:$0xf]  ;;  %v37_v21 = vld [vmem:[%s260_s1 + $0xa8] sm:$0xff]  ;;  %v36_v22 = vld [vmem:[%s260_s1 + $0xa0] sm:$0xff] }
   0x8   :  { %60 = vmatpush1.msra.mxu0 %v28_v5  ;;  %v35_v23 = vld [vmem:[%s260_s1 + $0x98] sm:$0xff]  ;;  %v34_v24 = vld [vmem:[%s260_s1 + $0x90] sm:$0xff]  ;;  %v33_v25 = vld [vmem:[%s260_s1 + $0x88] sm:$0xff] }
   0x9   :  { %61 = vmatprep.subr.mxu0 %v134_v0  ;;  %v32_v26 = vld [vmem:[%s260_s1 + $0x80] sm:$0xff] }
   0xa   :  { %62 = vmatpush1.msra.mxu0 %v27_v6  ;;  %v14_v27 = vld [vmem:[%s261_s0] sm:$0xff] }
   0xb   :  { %63 = vmatprep.subr.mxu0 %v134_v0 }
   0xc   :  { %64 = vmatpush1.msra.mxu0 %v26_v8 }
   0xd   :  { %65 = vmatprep.subr.mxu0 %v134_v0 }
   0xe   :  { %66 = vmatpush1.msra.mxu0 %v25_v10 }
   0xf   :  { %67 = vmatprep.subr.mxu0 %v134_v0 }
  0x10   :  { %68 = vmatpush1.msra.mxu0 %v24_v11 }
  0x11   :  { %69 = vmatprep.subr.mxu0 %v134_v0 }
  0x12   :  { %70 = vmatpush1.msra.mxu0 %v23_v12 }
  0x13   :  { %71 = vmatprep.subr.mxu0 %v134_v0 }
  0x14   :  { %72 = vmatpush1.msra.mxu0 %v22_v13 }
  0x15   :  { %73 = vmatprep.subr.mxu0 %v134_v0 }
  0x16   :  { %74 = vmatpush1.msra.mxu0 %v21_v14 }
  0x17   :  { %75 = vmatprep.subr.mxu0 %v134_v0 }
  0x18   :  { %76 = vmatpush1.msra.mxu0 %v20_v15 }
  0x19   :  { %77 = vmatprep.subr.mxu0 %v134_v0 }
  0x1a   :  { %78 = vmatpush1.msra.mxu0 %v19_v16 }
  0x1b   :  { %79 = vmatprep.subr.mxu0 %v134_v0 }
  0x1c   :  { %80 = vmatpush1.msra.mxu0 %v18_v17 }
  0x1d   :  { %81 = vmatprep.subr.mxu0 %v134_v0 }
  0x1e   :  { %82 = vmatpush1.msra.mxu0 %v17_v18 }
  0x1f   :  { %83 = vmatprep.subr.mxu0 %v134_v0 }
  0x20   :  { %84 = vmatpush1.msra.mxu0 %v16_v19 }
  0x21   :  { %103 = vmatprep.subr.mxu0 %v134_v0 }
  0x22   :  { %129 = vmatpush2.msk.msra.mxu0 %vm49_vm1, %v38_v20 }
  0x23   :  { %105 = vmatprep.subr.mxu0 %v134_v0 }
  0x24   :  { %106 = vmatpush2.msra.mxu0 %v37_v21 }
  0x25   :  { %107 = vmatprep.subr.mxu0 %v134_v0 }
  0x26   :  { %108 = vmatpush2.msra.mxu0 %v36_v22 }
  0x27   :  { %109 = vmatprep.subr.mxu0 %v134_v0 }
  0x28   :  { %110 = vmatpush2.msra.mxu0 %v35_v23 }
  0x29   :  { %111 = vmatprep.subr.mxu0 %v134_v0 }
  0x2a   :  { %112 = vmatpush2.msra.mxu0 %v34_v24 }
  0x2b   :  { %113 = vmatprep.subr.mxu0 %v134_v0 }
  0x2c   :  { %114 = vmatpush2.msra.mxu0 %v33_v25 }
  0x2d   :  { %115 = vmatprep.subr.mxu0 %v134_v0 }
  0x2e   :  { %116 = vmatpush2.msra.mxu0 %v32_v26 }
  0x2f   :  { %118 = vmatmul.mubr.f32.vlgmr.msra.gmra.mxu0 %v14_v27 }
  0x7f   :  { %v43_v28 = vpop.permute.xlu0 %42 }
  0xef   :  { %v119_v29 = vpop.f32.mrf.mxu0 }
  0xf0   :  { %v120_v30 = vadd.f32 %v119_v29, %v43_v28 }
  0xf1   :  { %v121_v31 = vpop.f32.mrf.mxu0 }
  0xf2   :  { %v123_v32 = vmax.f32 %v120_v30, 0.0 }
  0xf4   :  { %124 = vst [vmem:[%s263_s3] sm:$0xff] %v123_v32 }

// kernel: short_bifpn_forward.15
= control target key start
LH: loop header
LB: loop body
LE: loop exit
PB: predicated region body
PF: predicated region fallthrough
CT: control target
= control target key end

     0   :  { %v157_v0 = vmov 0.0   ;;  %vm158_vm0 = vmmov 0   ;;  %v159_v3 = vmov 0   ;;  %vm30_vm1 = vcmask 588800   ;;  %s216_s1 = inlined_call_operand.vmem [shape: f32[72,128], index: 1, kind: input, shape index: {}]   ;;  %s217_s2 = inlined_call_operand.vmem [shape: f32[8,1], index: 2, kind: input, shape index: {}]   ;;  %s218_s0 = inlined_call_operand.vmem [shape: f32[8,72], index: 0, kind: input, shape index: {}]   ;;  %s219_s3 = inlined_call_operand.vmem [shape: f32[8,128], index: 3, kind: output, shape index: {}]  }
   0x1   :  { %128 = vmatprep.subr.mxu0 %v157_v0  ;;  %v23_v1 = vld [vmem:[%s216_s1 + $0x40] sm:$0xff]  ;;  %v22_v2 = vld [vmem:[%s216_s1 + $0x38] sm:$0xff]  ;;  %146 = vmatprep.mubr.msk.f32.mxu0 %vm158_vm0, %v157_v0  ;;  %v21_v4 = vld [vmem:[%s216_s1 + $0x30] sm:$0xff] }
   0x2   :  { %129 = vmatpush3.msra.mxu0 %v23_v1  ;;  %152 = vset.pattern.permute.xlu0 %v159_v3  ;;  %v24_v5 = vld [vmem:[%s217_s2] sm:$0xff]  ;;  %v20_v6 = vld [vmem:[%s216_s1 + $0x28] sm:$0xff]  ;;  %v18_v8 = vld [vmem:[%s216_s1 + $0x18] sm:$0xff] }
   0x3   :  { %130 = vmatprep.subr.mxu0 %v157_v0  ;;  %27 = vperm.xlu0 %152, %v24_v5   ;;  %v19_v7 = vld [vmem:[%s216_s1 + $0x20] sm:$0xff]  ;;  %v17_v9 = vld [vmem:[%s216_s1 + $0x10] sm:$0xff]  ;;  %v16_v10 = vld [vmem:[%s216_s1 + $0x8] sm:$0xff] }
   0x4   :  { %131 = vmatpush3.msra.mxu0 %v22_v2  ;;  %v15_v11 = vld [vmem:[%s216_s1] sm:$0xff] }
   0x5   :  { %132 = vmatprep.subr.mxu0 %v157_v0  ;;  %v14_v12 = vld [vmem:[%s218_s0] sm:$0xff] }
   0x6   :  { %133 = vmatpush3.msra.mxu0 %v21_v4 }
   0x7   :  { %134 = vmatprep.subr.mxu0 %v157_v0 }
   0x8   :  { %135 = vmatpush3.msra.mxu0 %v20_v6 }
   0x9   :  { %136 = vmatprep.subr.mxu0 %v157_v0 }
   0xa   :  { %137 = vmatpush3.msra.mxu0 %v19_v7 }
   0xb   :  { %138 = vmatprep.subr.mxu0 %v157_v0 }
   0xc   :  { %139 = vmatpush3.msra.mxu0 %v18_v8 }
   0xd   :  { %140 = vmatprep.subr.mxu0 %v157_v0 }
   0xe   :  { %141 = vmatpush3.msra.mxu0 %v17_v9 }
   0xf   :  { %142 = vmatprep.subr.mxu0 %v157_v0 }
  0x10   :  { %143 = vmatpush3.msra.mxu0 %v16_v10 }
  0x11   :  { %144 = vmatprep.subr.mxu0 %v157_v0 }
  0x12   :  { %145 = vmatpush3.msra.mxu0 %v15_v11 }
  0x13   :  { %147 = vmatmul.mubr.msk.f32.vlgmr.msra.gmra.mxu0 %vm30_vm1, %v14_v12 }
  0x7e   :  { %v28_v13 = vpop.permute.xlu0 %27 }
  0xd3   :  { %v100_v14 = vpop.f32.mrf.mxu0 }
  0xd4   :  { %v101_v15 = vadd.f32 %v100_v14, %v28_v13 }
  0xd5   :  { %v148_v16 = vpop.f32.mrf.mxu0 }
  0xd6   :  { %v117_v17 = vmul.f32 -1.442695, %v101_v15 }
  0xd8   :  { %153 = vpow2.f32 %v117_v17 }
  0xe5   :  { %v154_v18 = vpop.eup %153 }
  0xe6   :  { %v107_v19 = vadd.f32 1.0, %v154_v18 }
  0xe8   :  { %155 = vrcp.f32 %v107_v19 }
  0xf5   :  { %v156_v20 = vpop.eup %155 }
  0xf6   :  { %v110_v21 = vmul.f32 %v156_v20, %v101_v15 }
  0xf8   :  { %111 = vst [vmem:[%s219_s3] sm:$0xff] %v110_v21 }

// kernel: short_bifpn_forward.16
= control target key start
LH: loop header
LB: loop body
LE: loop exit
PB: predicated region body
PF: predicated region fallthrough
CT: control target
= control target key end

     0   :  { %vm38_vm0 = vcmask 1043456   ;;  %v178_v0 = vmov 0.0   ;;  %vm179_vm1 = vmmov 0   ;;  %v180_v3 = vmov 0   ;;  %s249_s1 = inlined_call_operand.vmem [shape: f32[100,128], index: 1, kind: input, shape index: {}]   ;;  %s250_s2 = inlined_call_operand.vmem [shape: f32[4,1], index: 2, kind: input, shape index: {}]   ;;  %s251_s0 = inlined_call_operand.vmem [shape: f32[4,100], index: 0, kind: input, shape index: {}]   ;;  %s252_s3 = inlined_call_operand.vmem [shape: f32[4,128], index: 3, kind: output, shape index: {}]  }
   0x1   :  { %141 = vmatprep.subr.mxu0 %v178_v0  ;;  %v27_v1 = vld [vmem:[%s249_s1 + $0x60] sm:$0xf]  ;;  %v26_v2 = vld [vmem:[%s249_s1 + $0x58] sm:$0xff]  ;;  %167 = vmatprep.mubr.msk.f32.mxu0 %vm179_vm1, %v178_v0  ;;  %v25_v4 = vld [vmem:[%s249_s1 + $0x50] sm:$0xff]  ;;  %vm34_vm2 = vcmask 818176  }
   0x2   :  { %142 = vmatpush3.msk.msra.mxu0 %vm38_vm0, %v27_v1  ;;  %173 = vset.pattern.permute.xlu0 %v180_v3  ;;  %v24_v5 = vld [vmem:[%s249_s1 + $0x48] sm:$0xff]  ;;  %v28_v6 = vld [vmem:[%s250_s2] sm:$0xf]  ;;  %v22_v8 = vld [vmem:[%s249_s1 + $0x38] sm:$0xff] }
   0x3   :  { %143 = vmatprep.subr.mxu0 %v178_v0  ;;  %31 = vperm.xlu0 %173, %v28_v6   ;;  %v23_v7 = vld [vmem:[%s249_s1 + $0x40] sm:$0xff]  ;;  %v21_v9 = vld [vmem:[%s249_s1 + $0x30] sm:$0xff]  ;;  %v20_v10 = vld [vmem:[%s249_s1 + $0x28] sm:$0xff] }
   0x4   :  { %144 = vmatpush3.msra.mxu0 %v26_v2  ;;  %v19_v11 = vld [vmem:[%s249_s1 + $0x20] sm:$0xff]  ;;  %v18_v12 = vld [vmem:[%s249_s1 + $0x18] sm:$0xff]  ;;  %v17_v13 = vld [vmem:[%s249_s1 + $0x10] sm:$0xff] }
   0x5   :  { %145 = vmatprep.subr.mxu0 %v178_v0  ;;  %v16_v14 = vld [vmem:[%s249_s1 + $0x8] sm:$0xff]  ;;  %v15_v15 = vld [vmem:[%s249_s1] sm:$0xff] }
   0x6   :  { %146 = vmatpush3.msra.mxu0 %v25_v4  ;;  %v14_v16 = vld [vmem:[%s251_s0] sm:$0xf] }
   0x7   :  { %147 = vmatprep.subr.mxu0 %v178_v0 }
   0x8   :  { %148 = vmatpush3.msra.mxu0 %v24_v5 }
   0x9   :  { %149 = vmatprep.subr.mxu0 %v178_v0 }
   0xa   :  { %150 = vmatpush3.msra.mxu0 %v23_v7 }
   0xb   :  { %151 = vmatprep.subr.mxu0 %v178_v0 }
   0xc   :  { %152 = vmatpush3.msra.mxu0 %v22_v8 }
   0xd   :  { %153 = vmatprep.subr.mxu0 %v178_v0 }
   0xe   :  { %154 = vmatpush3.msra.mxu0 %v21_v9 }
   0xf   :  { %155 = vmatprep.subr.mxu0 %v178_v0 }
  0x10   :  { %156 = vmatpush3.msra.mxu0 %v20_v10 }
  0x11   :  { %157 = vmatprep.subr.mxu0 %v178_v0 }
  0x12   :  { %158 = vmatpush3.msra.mxu0 %v19_v11 }
  0x13   :  { %159 = vmatprep.subr.mxu0 %v178_v0 }
  0x14   :  { %160 = vmatpush3.msra.mxu0 %v18_v12 }
  0x15   :  { %161 = vmatprep.subr.mxu0 %v178_v0 }
  0x16   :  { %162 = vmatpush3.msra.mxu0 %v17_v13 }
  0x17   :  { %163 = vmatprep.subr.mxu0 %v178_v0 }
  0x18   :  { %164 = vmatpush3.msra.mxu0 %v16_v14 }
  0x19   :  { %165 = vmatprep.subr.mxu0 %v178_v0 }
  0x1a   :  { %166 = vmatpush3.msra.mxu0 %v15_v15 }
  0x1b   :  { %168 = vmatmul.mubr.msk.f32.vlgmr.msra.gmra.mxu0 %vm34_vm2, %v14_v16 }
  0x7e   :  { %v32_v17 = vpop.permute.xlu0 %31 }
  0xdb   :  { %v108_v18 = vpop.f32.mrf.mxu0 }
  0xdc   :  { %v109_v19 = vadd.f32 %v108_v18, %v32_v17 }
  0xdd   :  { %v169_v20 = vpop.f32.mrf.mxu0 }
  0xde   :  { %v126_v21 = vmul.f32 -1.442695, %v109_v19 }
  0xe0   :  { %174 = vpow2.f32 %v126_v21 }
  0xed   :  { %v175_v22 = vpop.eup %174 }
  0xee   :  { %v115_v23 = vadd.f32 1.0, %v175_v22 }
  0xf0   :  { %176 = vrcp.f32 %v115_v23 }
  0xfd   :  { %v177_v24 = vpop.eup %176 }
  0xfe   :  { %v118_v25 = vmul.f32 %v177_v24, %v109_v19 }
 0x100   :  { %119 = vst [vmem:[%s252_s3] sm:$0xf] %v118_v25 }

// kernel: short_bifpn_forward.17
= control target key start
LH: loop header
LB: loop body
LE: loop exit
PB: predicated region body
PF: predicated region fallthrough
CT: control target
= control target key end

     0   :  { %vm69_vm0 = vcmask 1043456   ;;  %v231_v3 = vmov 0   ;;  %vm62_vm1 = vcmask 1014784   ;;  %s372_s1 = inlined_call_operand.vmem [shape: f32[252,128], index: 1, kind: input, shape index: {}]   ;;  %s373_s0 = inlined_call_operand.vmem [shape: f32[16,252], index: 0, kind: input, shape index: {}]   ;;  %s374_s2 = inlined_call_operand.vmem [shape: f32[16,1], index: 2, kind: input, shape index: {}]   ;;  %s375_s3 = inlined_call_operand.vmem [shape: f32[16,128], index: 3, kind: output, shape index: {}]  }
   0x1   :  { %v49_v0 = vld [vmem:[%s372_s1 + $0xf8] sm:$0xf]  ;;  %v48_v2 = vld [vmem:[%s372_s1 + $0xf0] sm:$0xff]  ;;  %230 = vset.pattern.permute.xlu0 %v231_v3  ;;  %v47_v5 = vld [vmem:[%s372_s1 + $0xe8] sm:$0xff] }
   0x2   :  { %v33_v1 = vld [vmem:[%s372_s1 + $0x78] sm:$0xff]  ;;  %159 = vmatprep.subr.msk.mxu0 %vm69_vm0, %v49_v0  ;;  %197 = vmatprep.subr.msk.mxu1 %vm69_vm0, %v49_v0  ;;  %v32_v4 = vld [vmem:[%s372_s1 + $0x70] sm:$0xff]  ;;  %v31_v6 = vld [vmem:[%s372_s1 + $0x68] sm:$0xff] }
   0x3   :  { %160 = vmatpush3.msra.mxu0 %v33_v1  ;;  %213 = vmatpush3.msra.mxu1 %v33_v1  ;;  %v46_v7 = vld [vmem:[%s372_s1 + $0xe0] sm:$0xff]  ;;  %v45_v9 = vld [vmem:[%s372_s1 + $0xd8] sm:$0xff]  ;;  %v44_v11 = vld [vmem:[%s372_s1 + $0xd0] sm:$0xff] }
   0x4   :  { %161 = vmatprep.subr.mxu0 %v48_v2  ;;  %198 = vmatprep.subr.mxu1 %v48_v2  ;;  %v30_v8 = vld [vmem:[%s372_s1 + $0x60] sm:$0xff]  ;;  %v29_v10 = vld [vmem:[%s372_s1 + $0x58] sm:$0xff]  ;;  %v28_v12 = vld [vmem:[%s372_s1 + $0x50] sm:$0xff] }
   0x5   :  { %162 = vmatpush3.msra.mxu0 %v32_v4  ;;  %214 = vmatpush3.msra.mxu1 %v32_v4  ;;  %v43_v13 = vld [vmem:[%s372_s1 + $0xc8] sm:$0xff]  ;;  %v42_v15 = vld [vmem:[%s372_s1 + $0xc0] sm:$0xff]  ;;  %v41_v17 = vld [vmem:[%s372_s1 + $0xb8] sm:$0xff] }
   0x6   :  { %163 = vmatprep.subr.mxu0 %v47_v5  ;;  %199 = vmatprep.subr.mxu1 %v47_v5  ;;  %v27_v14 = vld [vmem:[%s372_s1 + $0x48] sm:$0xff]  ;;  %v26_v16 = vld [vmem:[%s372_s1 + $0x40] sm:$0xff]  ;;  %v25_v18 = vld [vmem:[%s372_s1 + $0x38] sm:$0xff] }
   0x7   :  { %164 = vmatpush3.msra.mxu0 %v31_v6  ;;  %215 = vmatpush3.msra.mxu1 %v31_v6  ;;  %v40_v19 = vld [vmem:[%s372_s1 + $0xb0] sm:$0xff]  ;;  %v39_v21 = vld [vmem:[%s372_s1 + $0xa8] sm:$0xff]  ;;  %v38_v23 = vld [vmem:[%s372_s1 + $0xa0] sm:$0xff] }
   0x8   :  { %165 = vmatprep.subr.mxu0 %v46_v7  ;;  %200 = vmatprep.subr.mxu1 %v46_v7  ;;  %v24_v20 = vld [vmem:[%s372_s1 + $0x30] sm:$0xff]  ;;  %v23_v22 = vld [vmem:[%s372_s1 + $0x28] sm:$0xff]  ;;  %v22_v24 = vld [vmem:[%s372_s1 + $0x20] sm:$0xff] }
   0x9   :  { %166 = vmatpush3.msra.mxu0 %v30_v8  ;;  %216 = vmatpush3.msra.mxu1 %v30_v8  ;;  %v37_v25 = vld [vmem:[%s372_s1 + $0x98] sm:$0xff]  ;;  %v36_v27 = vld [vmem:[%s372_s1 + $0x90] sm:$0xff]  ;;  %v35_v29 = vld [vmem:[%s372_s1 + $0x88] sm:$0xff] }
   0xa   :  { %167 = vmatprep.subr.mxu0 %v45_v9  ;;  %201 = vmatprep.subr.mxu1 %v45_v9  ;;  %v21_v26 = vld [vmem:[%s372_s1 + $0x18] sm:$0xff]  ;;  %v20_v28 = vld [vmem:[%s372_s1 + $0x10] sm:$0xff]  ;;  %v19_v30 = vld [vmem:[%s372_s1 + $0x8] sm:$0xff] }
   0xb   :  { %168 = vmatpush3.msra.mxu0 %v29_v10  ;;  %217 = vmatpush3.msra.mxu1 %v29_v10  ;;  %v34_v31 = vld [vmem:[%s372_s1 + $0x80] sm:$0xff]  ;;  %v15_v33 = vld [vmem:[%s373_s0 + $0x8] sm:$0xff]  ;;  %v17_v34 = vld [vmem:[%s373_s0 + $0x18] sm:$0xff] }
   0xc   :  { %169 = vmatprep.subr.mxu0 %v44_v11  ;;  %202 = vmatprep.subr.mxu1 %v44_v11  ;;  %v18_v32 = vld [vmem:[%s372_s1] sm:$0xff]  ;;  %v16_v36 = vld [vmem:[%s373_s0 + $0x10] sm:$0xff]  ;;  %v51_v38 = vld [vmem:[%s374_s2 + $0x8] sm:$0xff] }
   0xd   :  { %170 = vmatpush3.msra.mxu0 %v28_v12  ;;  %218 = vmatpush3.msra.mxu1 %v28_v12  ;;  %v14_v35 = vld [vmem:[%s373_s0] sm:$0xff] }
   0xe   :  { %171 = vmatprep.subr.mxu0 %v43_v13  ;;  %203 = vmatprep.subr.mxu1 %v43_v13  ;;  %v50_v37 = vld [vmem:[%s374_s2] sm:$0xff] }
   0xf   :  { %172 = vmatpush3.msra.mxu0 %v27_v14  ;;  %219 = vmatpush3.msra.mxu1 %v27_v14 }
  0x10   :  { %173 = vmatprep.subr.mxu0 %v42_v15  ;;  %204 = vmatprep.subr.mxu1 %v42_v15 }
  0x11   :  { %174 = vmatpush3.msra.mxu0 %v26_v16  ;;  %220 = vmatpush3.msra.mxu1 %v26_v16 }
  0x12   :  { %175 = vmatprep.subr.mxu0 %v41_v17  ;;  %205 = vmatprep.subr.mxu1 %v41_v17 }
  0x13   :  { %176 = vmatpush3.msra.mxu0 %v25_v18  ;;  %221 = vmatpush3.msra.mxu1 %v25_v18 }
  0x14   :  { %177 = vmatprep.subr.mxu0 %v40_v19  ;;  %206 = vmatprep.subr.mxu1 %v40_v19 }
  0x15   :  { %178 = vmatpush3.msra.mxu0 %v24_v20  ;;  %222 = vmatpush3.msra.mxu1 %v24_v20 }
  0x16   :  { %179 = vmatprep.subr.mxu0 %v39_v21  ;;  %207 = vmatprep.subr.mxu1 %v39_v21 }
  0x17   :  { %180 = vmatpush3.msra.mxu0 %v23_v22  ;;  %223 = vmatpush3.msra.mxu1 %v23_v22 }
  0x18   :  { %181 = vmatprep.subr.mxu0 %v38_v23  ;;  %208 = vmatprep.subr.mxu1 %v38_v23 }
  0x19   :  { %182 = vmatpush3.msra.mxu0 %v22_v24  ;;  %224 = vmatpush3.msra.mxu1 %v22_v24 }
  0x1a   :  { %183 = vmatprep.subr.mxu0 %v37_v25  ;;  %209 = vmatprep.subr.mxu1 %v37_v25 }
  0x1b   :  { %184 = vmatpush3.msra.mxu0 %v21_v26  ;;  %225 = vmatpush3.msra.mxu1 %v21_v26 }
  0x1c   :  { %185 = vmatprep.subr.mxu0 %v36_v27  ;;  %210 = vmatprep.subr.mxu1 %v36_v27 }
  0x1d   :  { %186 = vmatpush3.msra.mxu0 %v20_v28  ;;  %226 = vmatpush3.msra.mxu1 %v20_v28 }
  0x1e   :  { %187 = vmatprep.subr.mxu0 %v35_v29  ;;  %211 = vmatprep.subr.mxu1 %v35_v29 }
  0x1f   :  { %188 = vmatpush3.msra.mxu0 %v19_v30  ;;  %227 = vmatpush3.msra.mxu1 %v19_v30 }
  0x20   :  { %189 = vmatprep.subr.mxu0 %v34_v31  ;;  %212 = vmatprep.subr.mxu1 %v34_v31 }
  0x21   :  { %190 = vmatpush3.msra.mxu0 %v18_v32  ;;  %228 = vmatpush3.msra.mxu1 %v18_v32 }
  0x22   :  { %157 = vmatprep.mubr.msk.f32.mxu0 %vm62_vm1, %v15_v33  ;;  %158 = vmatprep.mubr.msk.f32.mxu1 %vm62_vm1, %v17_v34 }
  0x23   :  { %138 = vmatmul.mubr.f32.vlgmr.msra.gmra.mxu0 %v14_v35  ;;  %143 = vmatmul.mubr.f32.vlgmr.msra.gmra.mxu1 %v16_v36 }
  0x24   :  { %54 = vperm.xlu0 %230, %v50_v37  }
  0x28   :  { %59 = vperm.xlu0 %230, %v51_v38  }
  0x9f   :  { %v55_v39 = vpop.permute.xlu0 %54 }
  0xa3   :  { %v60_v46 = vpop.permute.xlu0 %59 }
  0xe3   :  { %v191_v40 = vpop.f32.mrf.mxu0  ;;  %v194_v41 = vpop.f32.mrf.mxu1 }
  0xe5   :  { %v192_v42 = vpop.f32.mrf.mxu0  ;;  %v195_v43 = vpop.f32.mrf.mxu1 }
  0xe6   :  { %v193_v44 = vadd.f32 %v192_v42, %v191_v40  ;;  %v196_v45 = vadd.f32 %v195_v43, %v194_v41 }
  0xe8   :  { %v140_v47 = vadd.f32 %v193_v44, %v55_v39  ;;  %v145_v48 = vadd.f32 %v196_v45, %v60_v46 }
  0xea   :  { %v148_v49 = vmax.f32 %v140_v47, 0.0  ;;  %v149_v50 = vmax.f32 %v145_v48, 0.0 }
  0xec   :  { %150 = vst [vmem:[%s375_s3] sm:$0xff] %v148_v49  ;;  %151 = vst [vmem:[%s375_s3 + $0x8] sm:$0xff] %v149_v50 }

</bundles_post_ra>
